<compile_context>
chip_gen: v7x
topology: tpu7x:2x2x1
jax: 0.10.0
libtpu: 0.0.40
codegen_flags: <defaults>
</compile_context>

<pallas_src>
import functools
import math

import jax
import jax.numpy as jnp
import numpy as np
from jax.experimental import pallas as pl
from jax.experimental.pallas import tpu as pltpu

_LN_EPS = 1e-5
_MASK_NEG = -1e9
_VMEM_LIMIT = 48 * 1024 * 1024  # explicit scoped-VMEM budget (headroom on v7x 64 MiB)


# ---------------------- single-buffered weight BlockSpecs ----------------------

def _probe_single_buffer_mode():
    """pl.Buffered(1) on grid-invariant blocks halves their VMEM residency
    (no double-buffering of blocks that never change).  Probe once; fall back
    to default pipelining if this jax build rejects it."""
    try:
        mode = pl.Buffered(1)

        def _k(w_ref, o_ref):
            o_ref[...] = w_ref[...] * 2.0

        out = pl.pallas_call(
            _k,
            out_shape=jax.ShapeDtypeStruct((16, 128), jnp.float32),
            grid=(2,),
            in_specs=[pl.BlockSpec((8, 128), lambda i: (0, 0),
                                   pipeline_mode=mode)],
            out_specs=pl.BlockSpec((8, 128), lambda i: (i, 0)),
        )(jnp.ones((8, 128), jnp.float32))
        jax.block_until_ready(out)
        return mode
    except Exception:
        return None


_WEIGHT_MODE = _probe_single_buffer_mode()


def _wspec(shape, index_map):
    """BlockSpec for grid-invariant operands (weights / biases / LN params)."""
    if _WEIGHT_MODE is not None:
        return pl.BlockSpec(shape, index_map, pipeline_mode=_WEIGHT_MODE)
    return pl.BlockSpec(shape, index_map)


# ------------------------------ kernel helpers ---------------------------------

def _layernorm(z, g, b, eps):
    mean = jnp.mean(z, axis=-1, keepdims=True)
    cen = z - mean
    var = jnp.mean(cen * cen, axis=-1, keepdims=True)
    return cen * jax.lax.rsqrt(var + eps) * g + b


def _mha_heads(q_t, k_t, v_t, wo_hvd, bias, scale):
    """Head-batched scaled-dot-product attention + output projection.

    q_t, k_t : (h, d_k, T*) f32   (projection is computed transposed so the
    v_t      : (h, d_v, Tk) f32    head split is a free leading-axis reshape)
    wo_hvd   : (h, d_v, D)  bf16
    bias     : (Tq, Tk) additive f32 or None
    Returns concat_heads(attn) @ Wo  as (Tq, D) f32 (output bias added by caller).
    """
    q = jnp.swapaxes(q_t, 1, 2).astype(jnp.bfloat16)          # (h, Tq, d_k)
    k = k_t.astype(jnp.bfloat16)                              # (h, d_k, Tk)
    v = v_t.astype(jnp.bfloat16)                              # (h, d_v, Tk)

    # scores: batch over heads, contract d_k -> (h, Tq, Tk)
    s = jnp.einsum('hqd,hdk->hqk', q, k,
                   preferred_element_type=jnp.float32) * scale
    if bias is not None:
        s = s + bias                                          # broadcast over h
    s = s - jnp.max(s, axis=-1, keepdims=True)
    p = jnp.exp(s)
    p = p * pl.reciprocal(jnp.sum(p, axis=-1, keepdims=True), approx=True)

    # attention output: contract Tk -> (h, Tq, d_v)
    o = jnp.einsum('hqk,hvk->hqv', p.astype(jnp.bfloat16), v,
                   preferred_element_type=jnp.float32)
    # per-head output projection, reduced over heads -> (Tq, D)
    y = jnp.einsum('hqv,hve->hqe', o.astype(jnp.bfloat16), wo_hvd,
                   preferred_element_type=jnp.float32)
    return jnp.sum(y, axis=0)


# ------------------------------- Pallas kernels ---------------------------------

def _self_attn_block_kernel(x_ref, wqkv_ref, bqkv_ref, wo_ref, bo_ref,
                            g_ref, b_ref, o_ref,
                            *, h, d_k, d_v, scale, eps, causal, bb):
    T = x_ref.shape[1]
    if causal:
        # causal mask generated in-kernel: no (T,T) HBM/VMEM mask stream
        row = jax.lax.broadcasted_iota(jnp.int32, (T, T), 0)
        col = jax.lax.broadcasted_iota(jnp.int32, (T, T), 1)
        bias = jnp.where(col <= row, 0.0, _MASK_NEG).astype(jnp.float32)
    else:
        bias = None

    wqkv = wqkv_ref[...]                  # (3*h*d_k, D) bf16, PyTorch (out,in)
    bqkv = bqkv_ref[...]                  # (3*h*d_k, 1) f32
    wo = wo_ref[...]                      # (h, d_v, D)  bf16
    bo = bo_ref[...]                      # (1, D)       f32
    g = g_ref[...]
    beta = b_ref[...]

    for i in range(bb):                   # static unroll over batch rows
        x_bf = x_ref[i]                   # (T, D) bf16
        # fused, transposed QKV projection -> (3*h*d_k, T) f32
        qkv_t = jax.lax.dot_general(
            wqkv, x_bf, (((1,), (1,)), ((), ())),
            preferred_element_type=jnp.float32) + bqkv
        qkv_t = qkv_t.reshape(3 * h, d_k, T)   # free head split (d_k % 8 == 0)
        q_t = qkv_t[:h]
        k_t = qkv_t[h:2 * h]
        v_t = qkv_t[2 * h:]
        y = _mha_heads(q_t, k_t, v_t, wo, bias, scale) + bo    # (T, D) f32
        o_ref[i] = _layernorm(y + x_bf.astype(jnp.float32), g, beta, eps
                              ).astype(o_ref.dtype)


def _cross_attn_block_kernel(x_ref, enc_ref, wq_ref, bq_ref, wkv_ref, bkv_ref,
                             wo_ref, bo_ref, g_ref, b_ref, o_ref,
                             *, h, d_k, d_v, scale, eps, bb):
    T = x_ref.shape[1]
    S = enc_ref.shape[1]
    wq = wq_ref[...]
    bq = bq_ref[...]
    wkv = wkv_ref[...]
    bkv = bkv_ref[...]
    wo = wo_ref[...]
    bo = bo_ref[...]
    g = g_ref[...]
    beta = b_ref[...]

    for i in range(bb):
        x_bf = x_ref[i]                   # (T, D)  bf16
        e_bf = enc_ref[i]                 # (S, De) bf16
        q_t = (jax.lax.dot_general(wq, x_bf, (((1,), (1,)), ((), ())),
                                   preferred_element_type=jnp.float32)
               + bq).reshape(h, d_k, T)
        kv_t = (jax.lax.dot_general(wkv, e_bf, (((1,), (1,)), ((), ())),
                                    preferred_element_type=jnp.float32)
                + bkv).reshape(2 * h, d_k, S)
        k_t = kv_t[:h]
        v_t = kv_t[h:]
        y = _mha_heads(q_t, k_t, v_t, wo, None, scale) + bo
        o_ref[i] = _layernorm(y + x_bf.astype(jnp.float32), g, beta, eps
                              ).astype(o_ref.dtype)


def _ffn_block_kernel(x_ref, w1_ref, b1_ref, w2_ref, b2_ref, g_ref, b_ref,
                      o_ref, acc_ref, *, eps):
    fi = pl.program_id(1)

    @pl.when(fi == 0)
    def _():
        acc_ref[...] = jnp.zeros_like(acc_ref)

    x_bf = x_ref[...]                                          # (tm, D) bf16
    hdn = jnp.dot(x_bf, w1_ref[...],
                  preferred_element_type=jnp.float32) + b1_ref[...]
    hdn = jnp.maximum(hdn, 0.0)
    acc_ref[...] += jnp.dot(hdn.astype(jnp.bfloat16), w2_ref[...],
                            preferred_element_type=jnp.float32)

    @pl.when(fi == pl.num_programs(1) - 1)
    def _():
        y = acc_ref[...] + b2_ref[...]
        o_ref[...] = _layernorm(y + x_bf.astype(jnp.float32),
                                g_ref[...], b_ref[...], eps).astype(o_ref.dtype)


# -------------------------------- block wrappers --------------------------------

def _pick_bb(B, T):
    """Batch rows per attention grid step: amortize the ~0.35us/step overhead,
    but keep >= 2 grid steps when B allows (v7x megacore sharding)."""
    if B <= 1:
        return 1
    bb = max(1, min(B // 2, max(1, 256 // max(T, 1)), 8))
    while B % bb:
        bb -= 1
    return max(bb, 1)


def self_attention_block(p, ln_g, ln_b, x, h, d_k, d_v, causal):
    B, T, D = x.shape
    n_qkv = p["wqkv"].shape[0]
    bb = _pick_bb(B, T)
    kernel = functools.partial(_self_attn_block_kernel, h=h, d_k=d_k, d_v=d_v,
                               scale=1.0 / math.sqrt(d_k), eps=_LN_EPS,
                               causal=causal, bb=bb)
    flops = (2 * B * T * D * n_qkv + 2 * B * h * T * T * (d_k + d_v)
             + 2 * B * h * T * d_v * D)
    ce = pl.CostEstimate(
        flops=int(flops),
        transcendentals=int(B * h * T * T + B * h * T + B * T),
        bytes_accessed=int(2 * B * T * D * 2 + (n_qkv * D + h * d_v * D) * 2
                           + 4 * (n_qkv + 3 * D)))
    return pl.pallas_call(
        kernel,
        out_shape=jax.ShapeDtypeStruct((B, T, D), jnp.bfloat16),
        grid=(B // bb,),
        in_specs=[
            pl.BlockSpec((bb, T, D), lambda b: (b, 0, 0)),
            _wspec((n_qkv, D), lambda b: (0, 0)),
            _wspec((n_qkv, 1), lambda b: (0, 0)),
            _wspec((h, d_v, D), lambda b: (0, 0, 0)),
            _wspec((1, D), lambda b: (0, 0)),
            _wspec((1, D), lambda b: (0, 0)),
            _wspec((1, D), lambda b: (0, 0)),
        ],
        out_specs=pl.BlockSpec((bb, T, D), lambda b: (b, 0, 0)),
        compiler_params=pltpu.CompilerParams(
            dimension_semantics=("parallel",),
            vmem_limit_bytes=_VMEM_LIMIT),
        cost_estimate=ce,
    )(x, p["wqkv"], p["bqkv"], p["wo"], p["bo"], ln_g, ln_b)


def cross_attention_block(p, ln_g, ln_b, x, enc, h, d_k, d_v):
    B, T, D = x.shape
    _, S, De = enc.shape
    n_q = p["wq"].shape[0]
    n_kv = p["wkv"].shape[0]
    bb = _pick_bb(B, max(T, S))
    kernel = functools.partial(_cross_attn_block_kernel, h=h, d_k=d_k, d_v=d_v,
                               scale=1.0 / math.sqrt(d_k), eps=_LN_EPS, bb=bb)
    flops = (2 * B * T * D * n_q + 2 * B * S * De * n_kv
             + 2 * B * h * T * S * (d_k + d_v) + 2 * B * h * T * d_v * D)
    ce = pl.CostEstimate(
        flops=int(flops),
        transcendentals=int(B * h * T * S + B * h * T + B * T),
        bytes_accessed=int(2 * B * T * D * 2 + B * S * De * 2
                           + (n_q * D + n_kv * De + h * d_v * D) * 2
                           + 4 * (n_q + n_kv + 3 * D)))
    return pl.pallas_call(
        kernel,
        out_shape=jax.ShapeDtypeStruct((B, T, D), jnp.bfloat16),
        grid=(B // bb,),
        in_specs=[
            pl.BlockSpec((bb, T, D), lambda b: (b, 0, 0)),
            pl.BlockSpec((bb, S, De), lambda b: (b, 0, 0)),
            _wspec((n_q, D), lambda b: (0, 0)),
            _wspec((n_q, 1), lambda b: (0, 0)),
            _wspec((n_kv, De), lambda b: (0, 0)),
            _wspec((n_kv, 1), lambda b: (0, 0)),
            _wspec((h, d_v, D), lambda b: (0, 0, 0)),
            _wspec((1, D), lambda b: (0, 0)),
            _wspec((1, D), lambda b: (0, 0)),
            _wspec((1, D), lambda b: (0, 0)),
        ],
        out_specs=pl.BlockSpec((bb, T, D), lambda b: (b, 0, 0)),
        compiler_params=pltpu.CompilerParams(
            dimension_semantics=("parallel",),
            vmem_limit_bytes=_VMEM_LIMIT),
        cost_estimate=ce,
    )(x, enc, p["wq"], p["bq"], p["wkv"], p["bkv"], p["wo"], p["bo"], ln_g, ln_b)


def ffn_block(p, ln_g, ln_b, x):
    B, T, D = x.shape
    M = B * T
    F = p["ff_w1"].shape[1]
    x2 = x.reshape(M, D)

    # Row tile: big blocks amortize per-step overhead, but keep >= 2 row steps
    # when possible so the "parallel" axis shards across v7x's two TCs.
    tm = min(M, 512)
    if pl.cdiv(M, tm) < 2 and M > 8:
        half = -(-M // 2)
        tm = max(8, ((half + 7) // 8) * 8)
    grid_m = pl.cdiv(M, tm)

    # Hidden-dim tile over F (reduction axis, 'arbitrary'): keeps full w1/w2 and
    # the (tm, F) hidden activation from having to be resident simultaneously.
    tf = F
    for cand in (2048, 1024, 512):
        if F > cand and F % cand == 0:
            tf = cand
            break
    grid_f = F // tf

    if grid_f == 1:     # w1 / b1 / w2 are grid-invariant -> single-buffer them
        w1_s = _wspec((D, tf), lambda i, f: (0, f))
        b1_s = _wspec((1, tf), lambda i, f: (0, f))
        w2_s = _wspec((tf, D), lambda i, f: (f, 0))
    else:
        w1_s = pl.BlockSpec((D, tf), lambda i, f: (0, f))
        b1_s = pl.BlockSpec((1, tf), lambda i, f: (0, f))
        w2_s = pl.BlockSpec((tf, D), lambda i, f: (f, 0))

    ce = pl.CostEstimate(
        flops=int(4 * M * D * F),
        transcendentals=int(M),
        bytes_accessed=int(2 * M * D * 2 + 2 * D * F * 2 + 4 * (F + 3 * D)))

    out = pl.pallas_call(
        functools.partial(_ffn_block_kernel, eps=_LN_EPS),
        out_shape=jax.ShapeDtypeStruct((M, D), jnp.bfloat16),
        grid=(grid_m, grid_f),
        in_specs=[
            pl.BlockSpec((tm, D), lambda i, f: (i, 0)),
            w1_s,
            b1_s,
            w2_s,
            _wspec((1, D), lambda i, f: (0, 0)),
            _wspec((1, D), lambda i, f: (0, 0)),
            _wspec((1, D), lambda i, f: (0, 0)),
        ],
        out_specs=pl.BlockSpec((tm, D), lambda i, f: (i, 0)),
        scratch_shapes=[pltpu.VMEM((tm, D), jnp.float32)],
        compiler_params=pltpu.CompilerParams(
            dimension_semantics=("parallel", "arbitrary"),
            vmem_limit_bytes=_VMEM_LIMIT),
        cost_estimate=ce,
    )(x2, p["ff_w1"], p["ff_b1"], p["ff_w2"], p["ff_b2"], ln_g, ln_b)
    return out.reshape(B, T, D)


# ----------------------------------- forward ------------------------------------

def positional_encoding_table(max_len, d_model):
    pos = np.arange(max_len, dtype=np.float32)[:, None]
    div = np.exp(np.arange(0, d_model, 2, dtype=np.float32)
                 * (-math.log(10000.0) / d_model))
    pe = np.zeros((max_len, d_model), dtype=np.float32)
    pe[:, 0::2] = np.sin(pos * div)
    pe[:, 1::2] = np.cos(pos * div)
    return jnp.asarray(pe)


def decoder_forward(params, target, encoder_output, *, causal, h, d_k, d_v):
    B, T = target.shape
    # TODO(synk): embedding gather + sinusoidal PE add kept as plain-JAX glue
    # (not a hot path); dropout is an eval-mode no-op.
    # TODO(synk): arbitrary self_attn_mask tensors are not streamed; the causal
    # mask (the standard decoder use) is generated inside the kernel instead.
    emb = params["token_emb"][target]                         # (B, T, D) f32
    x = (emb + params["pe"][:T]).astype(jnp.bfloat16)         # bf16 activations
    enc = encoder_output.astype(jnp.bfloat16)
    for lp in params["layers"]:
        x = self_attention_block(lp["self_attn"], lp["ln1_g"], lp["ln1_b"],
                                 x, h, d_k, d_v, causal)
        x = cross_attention_block(lp["cross_attn"], lp["ln2_g"], lp["ln2_b"],
                                  x, enc, h, d_k, d_v)
        x = ffn_block(lp, lp["ln3_g"], lp["ln3_b"], x)
    return x.astype(jnp.float32)


# --------------------------------- parameter init --------------------------------

def init_linear(key, fan_in, fan_out):
    k1, k2 = jax.random.split(key)
    bound = 1.0 / math.sqrt(fan_in)
    w = jax.random.uniform(k1, (fan_in, fan_out), jnp.float32, -bound, bound)
    b = jax.random.uniform(k2, (fan_out,), jnp.float32, -bound, bound)
    return w, b


def init_mha(key, d_model, h, d_k, d_v, fuse_qkv):
    ks = jax.random.split(key, 4)
    wq, bq = init_linear(ks[0], d_model, h * d_k)
    wk, bk = init_linear(ks[1], d_model, h * d_k)
    wv, bv = init_linear(ks[2], d_model, h * d_v)
    wo, bo = init_linear(ks[3], h * d_v, d_model)
    p = dict(
        wo=wo.reshape(h, d_v, d_model).astype(jnp.bfloat16),   # (h, d_v, D)
        bo=bo.reshape(1, -1),                                  # (1, D)  f32
    )
    if fuse_qkv:   # self-attention: fused Q|K|V, stored (out_features, D)
        p["wqkv"] = jnp.concatenate([wq, wk, wv], axis=1).T.astype(jnp.bfloat16)
        p["bqkv"] = jnp.concatenate([bq, bk, bv]).reshape(-1, 1)
    else:          # cross-attention: Q from x, fused K|V from encoder output
        p["wq"] = wq.T.astype(jnp.bfloat16)                    # (h*d_k, D)
        p["bq"] = bq.reshape(-1, 1)
        p["wkv"] = jnp.concatenate([wk, wv], axis=1).T.astype(jnp.bfloat16)
        p["bkv"] = jnp.concatenate([bk, bv]).reshape(-1, 1)
    return p


def init_decoder(key, num_tokens, N, h, d_model, d_word_vec, d_ff, max_len):
    d_k = d_v = d_model // h
    keys = jax.random.split(key, N + 1)
    params = {
        "token_emb": jax.random.normal(keys[0], (num_tokens, d_word_vec),
                                       jnp.float32),
        "pe": positional_encoding_table(max_len, d_word_vec),
        "layers": [],
    }
    for n in range(N):
        k_sa, k_ca, k_f1, k_f2 = jax.random.split(keys[n + 1], 4)
        w1, b1 = init_linear(k_f1, d_model, d_ff)
        w2, b2 = init_linear(k_f2, d_ff, d_model)
        params["layers"].append(dict(
            self_attn=init_mha(k_sa, d_model, h, d_k, d_v, fuse_qkv=True),
            cross_attn=init_mha(k_ca, d_model, h, d_k, d_v, fuse_qkv=False),
            ff_w1=w1.astype(jnp.bfloat16), ff_b1=b1.reshape(1, -1),
            ff_w2=w2.astype(jnp.bfloat16), ff_b2=b2.reshape(1, -1),
            ln1_g=jnp.ones((1, d_model), jnp.float32),
            ln1_b=jnp.zeros((1, d_model), jnp.float32),
            ln2_g=jnp.ones((1, d_model), jnp.float32),
            ln2_b=jnp.zeros((1, d_model), jnp.float32),
            ln3_g=jnp.ones((1, d_model), jnp.float32),
            ln3_b=jnp.zeros((1, d_model), jnp.float32),
        ))
    return params, d_k, d_v


# ------------------------------------- main --------------------------------------

if __name__ == "__main__":
    # small shapes consistent with the module
    num_tokens, N_layers, h, d_model = 50, 2, 4, 32
    d_ff = 4 * d_model
    B, T, S = 2, 8, 8

    key = jax.random.PRNGKey(0)
    k_par, k_tgt, k_enc = jax.random.split(key, 3)
    params, d_k, d_v = init_decoder(k_par, num_tokens, N_layers, h,
                                    d_model, d_model, d_ff, max_len=64)

    target = jax.random.randint(k_tgt, (B, T), 0, num_tokens)       # token ids
    encoder_output = jax.random.normal(k_enc, (B, S, d_model), jnp.float32)

    fwd = jax.jit(functools.partial(decoder_forward, causal=True,
                                    h=h, d_k=d_k, d_v=d_v))
    out = fwd(params, target, encoder_output)
    out = jax.block_until_ready(out)

    assert out.shape == (B, T, d_model) and out.dtype == jnp.float32
    assert bool(jnp.all(jnp.isfinite(out)))
    print("KERNEL_OK")
</pallas_src>

<mosaic_0001>
module attributes {stable_mosaic.version = 11 : i64} {
  func.func @_k(%arg0: i32, %arg1: memref<8x128xf32, #tpu.memory_space<vmem>>, %arg2: memref<8x128xf32, #tpu.memory_space<vmem>>) attributes {dimension_semantics = [#tpu.dimension_semantics<arbitrary>], iteration_bounds = array<i64: 2>, scalar_prefetch = 0 : i64, scratch_operands = 0 : i64, tpu.core_type = #tpu.core_type<tc>, window_params = [{pipeline_mode = #tpu.pipeline_mode<synchronous>, transform_indices = @transform_0, window_bounds = array<i64: 8, 128>}, {transform_indices = @transform_1, window_bounds = array<i64: 8, 128>}]} {
    %c0 = arith.constant 0 : index
    %c0_0 = arith.constant 0 : index
    %0 = vector.load %arg1[%c0, %c0_0] : memref<8x128xf32, #tpu.memory_space<vmem>>, vector<8x128xf32>
    %cst = arith.constant 2.000000e+00 : f32
    %1 = vector.broadcast %cst : f32 to vector<8x128xf32>
    %2 = arith.mulf %0, %1 : vector<8x128xf32>
    %c0_1 = arith.constant 0 : index
    %c0_2 = arith.constant 0 : index
    %3 = vector.load %arg2[%c0_1, %c0_2] : memref<8x128xf32, #tpu.memory_space<vmem>>, vector<8x128xf32>
    tpu.vector_store %arg2[%c0_1, %c0_2], %2 {strides = array<i32>} : memref<8x128xf32, #tpu.memory_space<vmem>>, vector<8x128xf32>,
    return
  }
  func.func @transform_0(%arg0: i32) -> (i32, i32) {
    %c0_i32 = arith.constant 0 : i32
    %c0_i32_0 = arith.constant 0 : i32
    %c0_i32_1 = arith.constant 0 : i32
    return %c0_i32, %c0_i32_0 : i32, i32
  }
  func.func @transform_1(%arg0: i32) -> (i32, i32) {
    %c0_i32 = arith.constant 0 : i32
    %c0_i32_0 = arith.constant 0 : i32
    return %arg0, %c0_i32 : i32, i32
  }
}

module attributes {stable_mosaic.version = 11 : i64} {
  func.func @_cross_attn_block_kernel(%arg0: i32, %arg1: memref<1x8x32xbf16, #tpu.memory_space<vmem>>, %arg2: memref<1x8x32xbf16, #tpu.memory_space<vmem>>, %arg3: memref<32x32xbf16, #tpu.memory_space<vmem>>, %arg4: memref<32x1xf32, #tpu.memory_space<vmem>>, %arg5: memref<64x32xbf16, #tpu.memory_space<vmem>>, %arg6: memref<64x1xf32, #tpu.memory_space<vmem>>, %arg7: memref<4x8x32xbf16, #tpu.memory_space<vmem>>, %arg8: memref<1x32xf32, #tpu.memory_space<vmem>>, %arg9: memref<1x32xf32, #tpu.memory_space<vmem>>, %arg10: memref<1x32xf32, #tpu.memory_space<vmem>>, %arg11: memref<1x8x32xbf16, #tpu.memory_space<vmem>>) attributes {dimension_semantics = [#tpu.dimension_semantics<parallel>], iteration_bounds = array<i64: 2>, scalar_prefetch = 0 : i64, scratch_operands = 0 : i64, tpu.core_type = #tpu.core_type<tc>, window_params = [{transform_indices = @transform_0, window_bounds = array<i64: 1, 8, 32>}, {transform_indices = @transform_1, window_bounds = array<i64: 1, 8, 32>}, {pipeline_mode = #tpu.pipeline_mode<synchronous>, transform_indices = @transform_2, window_bounds = array<i64: 32, 32>}, {pipeline_mode = #tpu.pipeline_mode<synchronous>, transform_indices = @transform_3, window_bounds = array<i64: 32, 1>}, {pipeline_mode = #tpu.pipeline_mode<synchronous>, transform_indices = @transform_4, window_bounds = array<i64: 64, 32>}, {pipeline_mode = #tpu.pipeline_mode<synchronous>, transform_indices = @transform_5, window_bounds = array<i64: 64, 1>}, {pipeline_mode = #tpu.pipeline_mode<synchronous>, transform_indices = @transform_6, window_bounds = array<i64: 4, 8, 32>}, {pipeline_mode = #tpu.pipeline_mode<synchronous>, transform_indices = @transform_7, window_bounds = array<i64: 1, 32>}, {pipeline_mode = #tpu.pipeline_mode<synchronous>, transform_indices = @transform_8, window_bounds = array<i64: 1, 32>}, {pipeline_mode = #tpu.pipeline_mode<synchronous>, transform_indices = @transform_9, window_bounds = array<i64: 1, 32>}, {transform_indices = @transform_10, window_bounds = array<i64: 1, 8, 32>}]} {
    %c0 = arith.constant 0 : index
    %c0_0 = arith.constant 0 : index
    %0 = vector.load %arg3[%c0, %c0_0] : memref<32x32xbf16, #tpu.memory_space<vmem>>, vector<32x32xbf16>
    %c0_1 = arith.constant 0 : index
    %c0_2 = arith.constant 0 : index
    %1 = vector.load %arg4[%c0_1, %c0_2] : memref<32x1xf32, #tpu.memory_space<vmem>>, vector<32x1xf32>
    %c0_3 = arith.constant 0 : index
    %c0_4 = arith.constant 0 : index
    %2 = vector.load %arg5[%c0_3, %c0_4] : memref<64x32xbf16, #tpu.memory_space<vmem>>, vector<64x32xbf16>
    %c0_5 = arith.constant 0 : index
    %c0_6 = arith.constant 0 : index
    %3 = vector.load %arg6[%c0_5, %c0_6] : memref<64x1xf32, #tpu.memory_space<vmem>>, vector<64x1xf32>
    %c0_7 = arith.constant 0 : index
    %c0_8 = arith.constant 0 : index
    %c0_9 = arith.constant 0 : index
    %4 = vector.load %arg7[%c0_7, %c0_8, %c0_9] : memref<4x8x32xbf16, #tpu.memory_space<vmem>>, vector<4x8x32xbf16>
    %c0_10 = arith.constant 0 : index
    %c0_11 = arith.constant 0 : index
    %5 = vector.load %arg8[%c0_10, %c0_11] : memref<1x32xf32, #tpu.memory_space<vmem>>, vector<1x32xf32>
    %c0_12 = arith.constant 0 : index
    %c0_13 = arith.constant 0 : index
    %6 = vector.load %arg9[%c0_12, %c0_13] : memref<1x32xf32, #tpu.memory_space<vmem>>, vector<1x32xf32>
    %c0_14 = arith.constant 0 : index
    %c0_15 = arith.constant 0 : index
    %7 = vector.load %arg10[%c0_14, %c0_15] : memref<1x32xf32, #tpu.memory_space<vmem>>, vector<1x32xf32>
    %c0_16 = arith.constant 0 : index
    %c0_17 = arith.constant 0 : index
    %c0_18 = arith.constant 0 : index
    %8 = vector.load %arg1[%c0_16, %c0_17, %c0_18] : memref<1x8x32xbf16, #tpu.memory_space<vmem>>, vector<1x8x32xbf16>
    %9 = vector.shape_cast %8 : vector<1x8x32xbf16> to vector<8x32xbf16>
    %c0_19 = arith.constant 0 : index
    %c0_20 = arith.constant 0 : index
    %c0_21 = arith.constant 0 : index
    %10 = vector.load %arg2[%c0_19, %c0_20, %c0_21] : memref<1x8x32xbf16, #tpu.memory_space<vmem>>, vector<1x8x32xbf16>
    %11 = vector.shape_cast %10 : vector<1x8x32xbf16> to vector<8x32xbf16>
    %cst = arith.constant dense<0.000000e+00> : vector<32x8xf32>
    %12 = tpu.matmul %0, %9, %cst {dimension_numbers = #tpu.dot_dimension_numbers<[1], [1], [0], [0], [0, 0, 1, 0], [], []>} : vector<32x32xbf16>, vector<8x32xbf16>, vector<32x8xf32> -> vector<32x8xf32>
    %13 = vector.broadcast %1 : vector<32x1xf32> to vector<32x8xf32>
    %14 = arith.addf %12, %13 : vector<32x8xf32>
    %15 = vector.shape_cast %14 : vector<32x8xf32> to vector<4x8x8xf32>
    %cst_22 = arith.constant dense<0.000000e+00> : vector<64x8xf32>
    %16 = tpu.matmul %2, %11, %cst_22 {dimension_numbers = #tpu.dot_dimension_numbers<[1], [1], [0], [0], [0, 0, 1, 0], [], []>} : vector<64x32xbf16>, vector<8x32xbf16>, vector<64x8xf32> -> vector<64x8xf32>
    %17 = vector.broadcast %3 : vector<64x1xf32> to vector<64x8xf32>
    %18 = arith.addf %16, %17 : vector<64x8xf32>
    %19 = vector.shape_cast %18 : vector<64x8xf32> to vector<8x8x8xf32>
    %20 = vector.extract_strided_slice %19 {offsets = [0, 0, 0], sizes = [4, 8, 8], strides = [1, 1, 1]} : vector<8x8x8xf32> to vector<4x8x8xf32>
    %21 = vector.extract_strided_slice %19 {offsets = [4, 0, 0], sizes = [4, 8, 8], strides = [1, 1, 1]} : vector<8x8x8xf32> to vector<4x8x8xf32>
    %22 = tpu.transpose %15, [0, 2, 1] : vector<4x8x8xf32> -> vector<4x8x8xf32>
    %23 = arith.truncf %22 : vector<4x8x8xf32> to vector<4x8x8xbf16>
    %24 = arith.truncf %20 : vector<4x8x8xf32> to vector<4x8x8xbf16>
    %25 = arith.truncf %21 : vector<4x8x8xf32> to vector<4x8x8xbf16>
    "tpu.trace_start"() <{level = 10 : i32, message = "hqd,hdk->hqk"}> : () -> ()
    %cst_23 = arith.constant dense<0.000000e+00> : vector<4x8x8xf32>
    %26 = tpu.matmul %23, %24, %cst_23 {dimension_numbers = #tpu.dot_dimension_numbers<[2], [1], [1], [2], [0, 0, 0, 1, 1, 2], [0], [0]>} : vector<4x8x8xbf16>, vector<4x8x8xbf16>, vector<4x8x8xf32> -> vector<4x8x8xf32>
    "tpu.trace_stop"() : () -> ()
    %cst_24 = arith.constant 0.353553385 : f32
    %27 = vector.broadcast %cst_24 : f32 to vector<4x8x8xf32>
    %28 = arith.mulf %26, %27 : vector<4x8x8xf32>
    %cst_25 = arith.constant dense<0xFF800000> : vector<4x8xf32>
    %29 = vector.multi_reduction <maximumf>, %28, %cst_25 [2] : vector<4x8x8xf32> to vector<4x8xf32>
    %30 = vector.shape_cast %29 : vector<4x8xf32> to vector<4x8x1xf32>
    %31 = vector.broadcast %30 : vector<4x8x1xf32> to vector<4x8x8xf32>
    %32 = arith.subf %28, %31 : vector<4x8x8xf32>
    %33 = math.exp %32 : vector<4x8x8xf32>
    %cst_26 = arith.constant dense<0.000000e+00> : vector<4x8xf32>
    %34 = vector.multi_reduction <add>, %33, %cst_26 [2] : vector<4x8x8xf32> to vector<4x8xf32>
    %35 = vector.shape_cast %34 : vector<4x8xf32> to vector<4x8x1xf32>
    %36 = tpu.reciprocal %35 {approx = true} : vector<4x8x1xf32> -> vector<4x8x1xf32>
    %37 = vector.broadcast %36 : vector<4x8x1xf32> to vector<4x8x8xf32>
    %38 = arith.mulf %33, %37 : vector<4x8x8xf32>
    %39 = arith.truncf %38 : vector<4x8x8xf32> to vector<4x8x8xbf16>
    "tpu.trace_start"() <{level = 10 : i32, message = "hqk,hvk->hqv"}> : () -> ()
    %cst_27 = arith.constant dense<0.000000e+00> : vector<4x8x8xf32>
    %40 = tpu.matmul %39, %25, %cst_27 {dimension_numbers = #tpu.dot_dimension_numbers<[2], [2], [1], [1], [0, 0, 0, 1, 1, 1], [0], [0]>} : vector<4x8x8xbf16>, vector<4x8x8xbf16>, vector<4x8x8xf32> -> vector<4x8x8xf32>
    "tpu.trace_stop"() : () -> ()
    %41 = arith.truncf %40 : vector<4x8x8xf32> to vector<4x8x8xbf16>
    "tpu.trace_start"() <{level = 10 : i32, message = "hqv,hve->hqe"}> : () -> ()
    %cst_28 = arith.constant dense<0.000000e+00> : vector<4x8x32xf32>
    %42 = tpu.matmul %41, %4, %cst_28 {dimension_numbers = #tpu.dot_dimension_numbers<[2], [1], [1], [2], [0, 0, 0, 1, 1, 2], [0], [0]>} : vector<4x8x8xbf16>, vector<4x8x32xbf16>, vector<4x8x32xf32> -> vector<4x8x32xf32>
    "tpu.trace_stop"() : () -> ()
    %cst_29 = arith.constant dense<0.000000e+00> : vector<8x32xf32>
    %43 = vector.multi_reduction <add>, %42, %cst_29 [0] : vector<4x8x32xf32> to vector<8x32xf32>
    %44 = vector.broadcast %5 : vector<1x32xf32> to vector<8x32xf32>
    %45 = arith.addf %43, %44 : vector<8x32xf32>
    %46 = arith.extf %9 : vector<8x32xbf16> to vector<8x32xf32>
    %47 = arith.addf %45, %46 : vector<8x32xf32>
    %cst_30 = arith.constant dense<0.000000e+00> : vector<8xf32>
    %48 = vector.multi_reduction <add>, %47, %cst_30 [1] : vector<8x32xf32> to vector<8xf32>
    %49 = vector.shape_cast %48 : vector<8xf32> to vector<8x1xf32>
    %cst_31 = arith.constant 3.200000e+01 : f32
    %50 = vector.broadcast %cst_31 : f32 to vector<8x1xf32>
    %51 = arith.divf %49, %50 : vector<8x1xf32>
    %52 = vector.broadcast %51 : vector<8x1xf32> to vector<8x32xf32>
    %53 = arith.subf %47, %52 : vector<8x32xf32>
    %54 = arith.mulf %53, %53 : vector<8x32xf32>
    %cst_32 = arith.constant dense<0.000000e+00> : vector<8xf32>
    %55 = vector.multi_reduction <add>, %54, %cst_32 [1] : vector<8x32xf32> to vector<8xf32>
    %56 = vector.shape_cast %55 : vector<8xf32> to vector<8x1xf32>
    %cst_33 = arith.constant 3.200000e+01 : f32
    %57 = vector.broadcast %cst_33 : f32 to vector<8x1xf32>
    %58 = arith.divf %56, %57 : vector<8x1xf32>
    %cst_34 = arith.constant 9.99999974E-6 : f32
    %59 = vector.broadcast %cst_34 : f32 to vector<8x1xf32>
    %60 = arith.addf %58, %59 : vector<8x1xf32>
    %61 = math.rsqrt %60 : vector<8x1xf32>
    %62 = vector.broadcast %61 : vector<8x1xf32> to vector<8x32xf32>
    %63 = arith.mulf %53, %62 : vector<8x32xf32>
    %64 = vector.broadcast %6 : vector<1x32xf32> to vector<8x32xf32>
    %65 = arith.mulf %63, %64 : vector<8x32xf32>
    %66 = vector.broadcast %7 : vector<1x32xf32> to vector<8x32xf32>
    %67 = arith.addf %65, %66 : vector<8x32xf32>
    %68 = arith.truncf %67 : vector<8x32xf32> to vector<8x32xbf16>
    %c0_35 = arith.constant 0 : index
    %c0_36 = arith.constant 0 : index
    %c0_37 = arith.constant 0 : index
    %69 = vector.load %arg11[%c0_35, %c0_36, %c0_37] : memref<1x8x32xbf16, #tpu.memory_space<vmem>>, vector<1x8x32xbf16>
    %70 = vector.shape_cast %69 : vector<1x8x32xbf16> to vector<8x32xbf16>
    %71 = vector.shape_cast %68 : vector<8x32xbf16> to vector<1x8x32xbf16>
    tpu.vector_store %arg11[%c0_35, %c0_36, %c0_37], %71 {strides = array<i32>} : memref<1x8x32xbf16, #tpu.memory_space<vmem>>, vector<1x8x32xbf16>,
    return
  }
  func.func @transform_0(%arg0: i32) -> (i32, i32, i32) {
    %c0_i32 = arith.constant 0 : i32
    %c0_i32_0 = arith.constant 0 : i32
    %c0_i32_1 = arith.constant 0 : i32
    return %arg0, %c0_i32, %c0_i32_0 : i32, i32, i32
  }
  func.func @transform_1(%arg0: i32) -> (i32, i32, i32) {
    %c0_i32 = arith.constant 0 : i32
    %c0_i32_0 = arith.constant 0 : i32
    %c0_i32_1 = arith.constant 0 : i32
    return %arg0, %c0_i32, %c0_i32_0 : i32, i32, i32
  }
  func.func @transform_2(%arg0: i32) -> (i32, i32) {
    %c0_i32 = arith.constant 0 : i32
    %c0_i32_0 = arith.constant 0 : i32
    %c0_i32_1 = arith.constant 0 : i32
    return %c0_i32, %c0_i32_0 : i32, i32
  }
  func.func @transform_3(%arg0: i32) -> (i32, i32) {
    %c0_i32 = arith.constant 0 : i32
    %c0_i32_0 = arith.constant 0 : i32
    %c0_i32_1 = arith.constant 0 : i32
    return %c0_i32, %c0_i32_0 : i32, i32
  }
  func.func @transform_4(%arg0: i32) -> (i32, i32) {
    %c0_i32 = arith.constant 0 : i32
    %c0_i32_0 = arith.constant 0 : i32
    %c0_i32_1 = arith.constant 0 : i32
    return %c0_i32, %c0_i32_0 : i32, i32
  }
  func.func @transform_5(%arg0: i32) -> (i32, i32) {
    %c0_i32 = arith.constant 0 : i32
    %c0_i32_0 = arith.constant 0 : i32
    %c0_i32_1 = arith.constant 0 : i32
    return %c0_i32, %c0_i32_0 : i32, i32
  }
  func.func @transform_6(%arg0: i32) -> (i32, i32, i32) {
    %c0_i32 = arith.constant 0 : i32
    %c0_i32_0 = arith.constant 0 : i32
    %c0_i32_1 = arith.constant 0 : i32
    %c0_i32_2 = arith.constant 0 : i32
    return %c0_i32, %c0_i32_0, %c0_i32_1 : i32, i32, i32
  }
  func.func @transform_7(%arg0: i32) -> (i32, i32) {
    %c0_i32 = arith.constant 0 : i32
    %c0_i32_0 = arith.constant 0 : i32
    %c0_i32_1 = arith.constant 0 : i32
    return %c0_i32, %c0_i32_0 : i32, i32
  }
  func.func @transform_8(%arg0: i32) -> (i32, i32) {
    %c0_i32 = arith.constant 0 : i32
    %c0_i32_0 = arith.constant 0 : i32
    %c0_i32_1 = arith.constant 0 : i32
    return %c0_i32, %c0_i32_0 : i32, i32
  }
  func.func @transform_9(%arg0: i32) -> (i32, i32) {
    %c0_i32 = arith.constant 0 : i32
    %c0_i32_0 = arith.constant 0 : i32
    %c0_i32_1 = arith.constant 0 : i32
    return %c0_i32, %c0_i32_0 : i32, i32
  }
  func.func @transform_10(%arg0: i32) -> (i32, i32, i32) {
    %c0_i32 = arith.constant 0 : i32
    %c0_i32_0 = arith.constant 0 : i32
    %c0_i32_1 = arith.constant 0 : i32
    return %arg0, %c0_i32, %c0_i32_0 : i32, i32, i32
  }
}

module attributes {stable_mosaic.version = 11 : i64} {
  func.func @_self_attn_block_kernel(%arg0: i32, %arg1: memref<1x8x32xbf16, #tpu.memory_space<vmem>>, %arg2: memref<96x32xbf16, #tpu.memory_space<vmem>>, %arg3: memref<96x1xf32, #tpu.memory_space<vmem>>, %arg4: memref<4x8x32xbf16, #tpu.memory_space<vmem>>, %arg5: memref<1x32xf32, #tpu.memory_space<vmem>>, %arg6: memref<1x32xf32, #tpu.memory_space<vmem>>, %arg7: memref<1x32xf32, #tpu.memory_space<vmem>>, %arg8: memref<1x8x32xbf16, #tpu.memory_space<vmem>>) attributes {dimension_semantics = [#tpu.dimension_semantics<parallel>], iteration_bounds = array<i64: 2>, scalar_prefetch = 0 : i64, scratch_operands = 0 : i64, tpu.core_type = #tpu.core_type<tc>, window_params = [{transform_indices = @transform_0, window_bounds = array<i64: 1, 8, 32>}, {pipeline_mode = #tpu.pipeline_mode<synchronous>, transform_indices = @transform_1, window_bounds = array<i64: 96, 32>}, {pipeline_mode = #tpu.pipeline_mode<synchronous>, transform_indices = @transform_2, window_bounds = array<i64: 96, 1>}, {pipeline_mode = #tpu.pipeline_mode<synchronous>, transform_indices = @transform_3, window_bounds = array<i64: 4, 8, 32>}, {pipeline_mode = #tpu.pipeline_mode<synchronous>, transform_indices = @transform_4, window_bounds = array<i64: 1, 32>}, {pipeline_mode = #tpu.pipeline_mode<synchronous>, transform_indices = @transform_5, window_bounds = array<i64: 1, 32>}, {pipeline_mode = #tpu.pipeline_mode<synchronous>, transform_indices = @transform_6, window_bounds = array<i64: 1, 32>}, {transform_indices = @transform_7, window_bounds = array<i64: 1, 8, 32>}]} {
    %0 = tpu.iota {dimensions = array<i32: 0>} : vector<8x8xi32>
    %1 = tpu.iota {dimensions = array<i32: 1>} : vector<8x8xi32>
    %2 = arith.cmpi sle, %1, %0 : vector<8x8xi32>
    %cst = arith.constant 0.000000e+00 : f32
    %cst_0 = arith.constant -1.000000e+09 : f32
    %3 = vector.broadcast %cst : f32 to vector<8x8xf32>
    %4 = vector.broadcast %cst_0 : f32 to vector<8x8xf32>
    %5 = arith.select %2, %3, %4 : vector<8x8xi1>, vector<8x8xf32>
    %c0 = arith.constant 0 : index
    %c0_1 = arith.constant 0 : index
    %6 = vector.load %arg2[%c0, %c0_1] : memref<96x32xbf16, #tpu.memory_space<vmem>>, vector<96x32xbf16>
    %c0_2 = arith.constant 0 : index
    %c0_3 = arith.constant 0 : index
    %7 = vector.load %arg3[%c0_2, %c0_3] : memref<96x1xf32, #tpu.memory_space<vmem>>, vector<96x1xf32>
    %c0_4 = arith.constant 0 : index
    %c0_5 = arith.constant 0 : index
    %c0_6 = arith.constant 0 : index
    %8 = vector.load %arg4[%c0_4, %c0_5, %c0_6] : memref<4x8x32xbf16, #tpu.memory_space<vmem>>, vector<4x8x32xbf16>
    %c0_7 = arith.constant 0 : index
    %c0_8 = arith.constant 0 : index
    %9 = vector.load %arg5[%c0_7, %c0_8] : memref<1x32xf32, #tpu.memory_space<vmem>>, vector<1x32xf32>
    %c0_9 = arith.constant 0 : index
    %c0_10 = arith.constant 0 : index
    %10 = vector.load %arg6[%c0_9, %c0_10] : memref<1x32xf32, #tpu.memory_space<vmem>>, vector<1x32xf32>
    %c0_11 = arith.constant 0 : index
    %c0_12 = arith.constant 0 : index
    %11 = vector.load %arg7[%c0_11, %c0_12] : memref<1x32xf32, #tpu.memory_space<vmem>>, vector<1x32xf32>
    %c0_13 = arith.constant 0 : index
    %c0_14 = arith.constant 0 : index
    %c0_15 = arith.constant 0 : index
    %12 = vector.load %arg1[%c0_13, %c0_14, %c0_15] : memref<1x8x32xbf16, #tpu.memory_space<vmem>>, vector<1x8x32xbf16>
    %13 = vector.shape_cast %12 : vector<1x8x32xbf16> to vector<8x32xbf16>
    %cst_16 = arith.constant dense<0.000000e+00> : vector<96x8xf32>
    %14 = tpu.matmul %6, %13, %cst_16 {dimension_numbers = #tpu.dot_dimension_numbers<[1], [1], [0], [0], [0, 0, 1, 0], [], []>} : vector<96x32xbf16>, vector<8x32xbf16>, vector<96x8xf32> -> vector<96x8xf32>
    %15 = vector.broadcast %7 : vector<96x1xf32> to vector<96x8xf32>
    %16 = arith.addf %14, %15 : vector<96x8xf32>
    %17 = vector.shape_cast %16 : vector<96x8xf32> to vector<12x8x8xf32>
    %18 = vector.extract_strided_slice %17 {offsets = [0, 0, 0], sizes = [4, 8, 8], strides = [1, 1, 1]} : vector<12x8x8xf32> to vector<4x8x8xf32>
    %19 = vector.extract_strided_slice %17 {offsets = [4, 0, 0], sizes = [4, 8, 8], strides = [1, 1, 1]} : vector<12x8x8xf32> to vector<4x8x8xf32>
    %20 = vector.extract_strided_slice %17 {offsets = [8, 0, 0], sizes = [4, 8, 8], strides = [1, 1, 1]} : vector<12x8x8xf32> to vector<4x8x8xf32>
    %21 = tpu.transpose %18, [0, 2, 1] : vector<4x8x8xf32> -> vector<4x8x8xf32>
    %22 = arith.truncf %21 : vector<4x8x8xf32> to vector<4x8x8xbf16>
    %23 = arith.truncf %19 : vector<4x8x8xf32> to vector<4x8x8xbf16>
    %24 = arith.truncf %20 : vector<4x8x8xf32> to vector<4x8x8xbf16>
    "tpu.trace_start"() <{level = 10 : i32, message = "hqd,hdk->hqk"}> : () -> ()
    %cst_17 = arith.constant dense<0.000000e+00> : vector<4x8x8xf32>
    %25 = tpu.matmul %22, %23, %cst_17 {dimension_numbers = #tpu.dot_dimension_numbers<[2], [1], [1], [2], [0, 0, 0, 1, 1, 2], [0], [0]>} : vector<4x8x8xbf16>, vector<4x8x8xbf16>, vector<4x8x8xf32> -> vector<4x8x8xf32>
    "tpu.trace_stop"() : () -> ()
    %cst_18 = arith.constant 0.353553385 : f32
    %26 = vector.broadcast %cst_18 : f32 to vector<4x8x8xf32>
    %27 = arith.mulf %25, %26 : vector<4x8x8xf32>
    %28 = vector.shape_cast %5 : vector<8x8xf32> to vector<1x8x8xf32>
    %29 = vector.broadcast %28 : vector<1x8x8xf32> to vector<4x8x8xf32>
    %30 = arith.addf %27, %29 : vector<4x8x8xf32>
    %cst_19 = arith.constant dense<0xFF800000> : vector<4x8xf32>
    %31 = vector.multi_reduction <maximumf>, %30, %cst_19 [2] : vector<4x8x8xf32> to vector<4x8xf32>
    %32 = vector.shape_cast %31 : vector<4x8xf32> to vector<4x8x1xf32>
    %33 = vector.broadcast %32 : vector<4x8x1xf32> to vector<4x8x8xf32>
    %34 = arith.subf %30, %33 : vector<4x8x8xf32>
    %35 = math.exp %34 : vector<4x8x8xf32>
    %cst_20 = arith.constant dense<0.000000e+00> : vector<4x8xf32>
    %36 = vector.multi_reduction <add>, %35, %cst_20 [2] : vector<4x8x8xf32> to vector<4x8xf32>
    %37 = vector.shape_cast %36 : vector<4x8xf32> to vector<4x8x1xf32>
    %38 = tpu.reciprocal %37 {approx = true} : vector<4x8x1xf32> -> vector<4x8x1xf32>
    %39 = vector.broadcast %38 : vector<4x8x1xf32> to vector<4x8x8xf32>
    %40 = arith.mulf %35, %39 : vector<4x8x8xf32>
    %41 = arith.truncf %40 : vector<4x8x8xf32> to vector<4x8x8xbf16>
    "tpu.trace_start"() <{level = 10 : i32, message = "hqk,hvk->hqv"}> : () -> ()
    %cst_21 = arith.constant dense<0.000000e+00> : vector<4x8x8xf32>
    %42 = tpu.matmul %41, %24, %cst_21 {dimension_numbers = #tpu.dot_dimension_numbers<[2], [2], [1], [1], [0, 0, 0, 1, 1, 1], [0], [0]>} : vector<4x8x8xbf16>, vector<4x8x8xbf16>, vector<4x8x8xf32> -> vector<4x8x8xf32>
    "tpu.trace_stop"() : () -> ()
    %43 = arith.truncf %42 : vector<4x8x8xf32> to vector<4x8x8xbf16>
    "tpu.trace_start"() <{level = 10 : i32, message = "hqv,hve->hqe"}> : () -> ()
    %cst_22 = arith.constant dense<0.000000e+00> : vector<4x8x32xf32>
    %44 = tpu.matmul %43, %8, %cst_22 {dimension_numbers = #tpu.dot_dimension_numbers<[2], [1], [1], [2], [0, 0, 0, 1, 1, 2], [0], [0]>} : vector<4x8x8xbf16>, vector<4x8x32xbf16>, vector<4x8x32xf32> -> vector<4x8x32xf32>
    "tpu.trace_stop"() : () -> ()
    %cst_23 = arith.constant dense<0.000000e+00> : vector<8x32xf32>
    %45 = vector.multi_reduction <add>, %44, %cst_23 [0] : vector<4x8x32xf32> to vector<8x32xf32>
    %46 = vector.broadcast %9 : vector<1x32xf32> to vector<8x32xf32>
    %47 = arith.addf %45, %46 : vector<8x32xf32>
    %48 = arith.extf %13 : vector<8x32xbf16> to vector<8x32xf32>
    %49 = arith.addf %47, %48 : vector<8x32xf32>
    %cst_24 = arith.constant dense<0.000000e+00> : vector<8xf32>
    %50 = vector.multi_reduction <add>, %49, %cst_24 [1] : vector<8x32xf32> to vector<8xf32>
    %51 = vector.shape_cast %50 : vector<8xf32> to vector<8x1xf32>
    %cst_25 = arith.constant 3.200000e+01 : f32
    %52 = vector.broadcast %cst_25 : f32 to vector<8x1xf32>
    %53 = arith.divf %51, %52 : vector<8x1xf32>
    %54 = vector.broadcast %53 : vector<8x1xf32> to vector<8x32xf32>
    %55 = arith.subf %49, %54 : vector<8x32xf32>
    %56 = arith.mulf %55, %55 : vector<8x32xf32>
    %cst_26 = arith.constant dense<0.000000e+00> : vector<8xf32>
    %57 = vector.multi_reduction <add>, %56, %cst_26 [1] : vector<8x32xf32> to vector<8xf32>
    %58 = vector.shape_cast %57 : vector<8xf32> to vector<8x1xf32>
    %cst_27 = arith.constant 3.200000e+01 : f32
    %59 = vector.broadcast %cst_27 : f32 to vector<8x1xf32>
    %60 = arith.divf %58, %59 : vector<8x1xf32>
    %cst_28 = arith.constant 9.99999974E-6 : f32
    %61 = vector.broadcast %cst_28 : f32 to vector<8x1xf32>
    %62 = arith.addf %60, %61 : vector<8x1xf32>
    %63 = math.rsqrt %62 : vector<8x1xf32>
    %64 = vector.broadcast %63 : vector<8x1xf32> to vector<8x32xf32>
    %65 = arith.mulf %55, %64 : vector<8x32xf32>
    %66 = vector.broadcast %10 : vector<1x32xf32> to vector<8x32xf32>
    %67 = arith.mulf %65, %66 : vector<8x32xf32>
    %68 = vector.broadcast %11 : vector<1x32xf32> to vector<8x32xf32>
    %69 = arith.addf %67, %68 : vector<8x32xf32>
    %70 = arith.truncf %69 : vector<8x32xf32> to vector<8x32xbf16>
    %c0_29 = arith.constant 0 : index
    %c0_30 = arith.constant 0 : index
    %c0_31 = arith.constant 0 : index
    %71 = vector.load %arg8[%c0_29, %c0_30, %c0_31] : memref<1x8x32xbf16, #tpu.memory_space<vmem>>, vector<1x8x32xbf16>
    %72 = vector.shape_cast %71 : vector<1x8x32xbf16> to vector<8x32xbf16>
    %73 = vector.shape_cast %70 : vector<8x32xbf16> to vector<1x8x32xbf16>
    tpu.vector_store %arg8[%c0_29, %c0_30, %c0_31], %73 {strides = array<i32>} : memref<1x8x32xbf16, #tpu.memory_space<vmem>>, vector<1x8x32xbf16>,
    return
  }
  func.func @transform_0(%arg0: i32) -> (i32, i32, i32) {
    %c0_i32 = arith.constant 0 : i32
    %c0_i32_0 = arith.constant 0 : i32
    %c0_i32_1 = arith.constant 0 : i32
    return %arg0, %c0_i32, %c0_i32_0 : i32, i32, i32
  }
  func.func @transform_1(%arg0: i32) -> (i32, i32) {
    %c0_i32 = arith.constant 0 : i32
    %c0_i32_0 = arith.constant 0 : i32
    %c0_i32_1 = arith.constant 0 : i32
    return %c0_i32, %c0_i32_0 : i32, i32
  }
  func.func @transform_2(%arg0: i32) -> (i32, i32) {
    %c0_i32 = arith.constant 0 : i32
    %c0_i32_0 = arith.constant 0 : i32
    %c0_i32_1 = arith.constant 0 : i32
    return %c0_i32, %c0_i32_0 : i32, i32
  }
  func.func @transform_3(%arg0: i32) -> (i32, i32, i32) {
    %c0_i32 = arith.constant 0 : i32
    %c0_i32_0 = arith.constant 0 : i32
    %c0_i32_1 = arith.constant 0 : i32
    %c0_i32_2 = arith.constant 0 : i32
    return %c0_i32, %c0_i32_0, %c0_i32_1 : i32, i32, i32
  }
  func.func @transform_4(%arg0: i32) -> (i32, i32) {
    %c0_i32 = arith.constant 0 : i32
    %c0_i32_0 = arith.constant 0 : i32
    %c0_i32_1 = arith.constant 0 : i32
    return %c0_i32, %c0_i32_0 : i32, i32
  }
  func.func @transform_5(%arg0: i32) -> (i32, i32) {
    %c0_i32 = arith.constant 0 : i32
    %c0_i32_0 = arith.constant 0 : i32
    %c0_i32_1 = arith.constant 0 : i32
    return %c0_i32, %c0_i32_0 : i32, i32
  }
  func.func @transform_6(%arg0: i32) -> (i32, i32) {
    %c0_i32 = arith.constant 0 : i32
    %c0_i32_0 = arith.constant 0 : i32
    %c0_i32_1 = arith.constant 0 : i32
    return %c0_i32, %c0_i32_0 : i32, i32
  }
  func.func @transform_7(%arg0: i32) -> (i32, i32, i32) {
    %c0_i32 = arith.constant 0 : i32
    %c0_i32_0 = arith.constant 0 : i32
    %c0_i32_1 = arith.constant 0 : i32
    return %arg0, %c0_i32, %c0_i32_0 : i32, i32, i32
  }
}

module attributes {stable_mosaic.version = 11 : i64} {
  func.func @_ffn_block_kernel(%arg0: i32, %arg1: i32, %arg2: memref<8x32xbf16, #tpu.memory_space<vmem>>, %arg3: memref<32x128xbf16, #tpu.memory_space<vmem>>, %arg4: memref<1x128xf32, #tpu.memory_space<vmem>>, %arg5: memref<128x32xbf16, #tpu.memory_space<vmem>>, %arg6: memref<1x32xf32, #tpu.memory_space<vmem>>, %arg7: memref<1x32xf32, #tpu.memory_space<vmem>>, %arg8: memref<1x32xf32, #tpu.memory_space<vmem>>, %arg9: memref<8x32xbf16, #tpu.memory_space<vmem>>, %arg10: memref<8x32xf32, #tpu.memory_space<vmem>>) attributes {dimension_semantics = [#tpu.dimension_semantics<parallel>, #tpu.dimension_semantics<arbitrary>], iteration_bounds = array<i64: 2, 1>, scalar_prefetch = 0 : i64, scratch_operands = 1 : i64, tpu.core_type = #tpu.core_type<tc>, window_params = [{transform_indices = @transform_0, window_bounds = array<i64: 8, 32>}, {transform_indices = @transform_1, window_bounds = array<i64: 32, 128>}, {transform_indices = @transform_2, window_bounds = array<i64: 1, 128>}, {transform_indices = @transform_3, window_bounds = array<i64: 128, 32>}, {pipeline_mode = #tpu.pipeline_mode<synchronous>, transform_indices = @transform_4, window_bounds = array<i64: 1, 32>}, {pipeline_mode = #tpu.pipeline_mode<synchronous>, transform_indices = @transform_5, window_bounds = array<i64: 1, 32>}, {pipeline_mode = #tpu.pipeline_mode<synchronous>, transform_indices = @transform_6, window_bounds = array<i64: 1, 32>}, {transform_indices = @transform_7, window_bounds = array<i64: 8, 32>}]} {
    %c0_i32 = arith.constant 0 : i32
    %0 = arith.cmpi eq, %arg1, %c0_i32 : i32
    %1 = arith.extui %0 : i1 to i32
    %c0_i32_0 = arith.constant 0 : i32
    %2 = arith.cmpi ne, %1, %c0_i32_0 : i32
    scf.if %2 {
      %cst_16 = arith.constant 0.000000e+00 : f32
      %20 = vector.broadcast %cst_16 : f32 to vector<8x32xf32>
      %c0_17 = arith.constant 0 : index
      %c0_18 = arith.constant 0 : index
      %21 = vector.load %arg10[%c0_17, %c0_18] : memref<8x32xf32, #tpu.memory_space<vmem>>, vector<8x32xf32>
      tpu.vector_store %arg10[%c0_17, %c0_18], %20 {strides = array<i32>} : memref<8x32xf32, #tpu.memory_space<vmem>>, vector<8x32xf32>,
    } else {
    }
    %c0 = arith.constant 0 : index
    %c0_1 = arith.constant 0 : index
    %3 = vector.load %arg2[%c0, %c0_1] : memref<8x32xbf16, #tpu.memory_space<vmem>>, vector<8x32xbf16>
    %c0_2 = arith.constant 0 : index
    %c0_3 = arith.constant 0 : index
    %4 = vector.load %arg3[%c0_2, %c0_3] : memref<32x128xbf16, #tpu.memory_space<vmem>>, vector<32x128xbf16>
    %cst = arith.constant dense<0.000000e+00> : vector<8x128xf32>
    %5 = tpu.matmul %3, %4, %cst {dimension_numbers = #tpu.dot_dimension_numbers<[1], [0], [0], [1], [0, 0, 1, 1], [], []>} : vector<8x32xbf16>, vector<32x128xbf16>, vector<8x128xf32> -> vector<8x128xf32>
    %c0_4 = arith.constant 0 : index
    %c0_5 = arith.constant 0 : index
    %6 = vector.load %arg4[%c0_4, %c0_5] : memref<1x128xf32, #tpu.memory_space<vmem>>, vector<1x128xf32>
    %7 = vector.broadcast %6 : vector<1x128xf32> to vector<8x128xf32>
    %8 = arith.addf %5, %7 : vector<8x128xf32>
    %cst_6 = arith.constant 0.000000e+00 : f32
    %9 = vector.broadcast %cst_6 : f32 to vector<8x128xf32>
    %10 = arith.maximumf %8, %9 : vector<8x128xf32>
    %c0_7 = arith.constant 0 : index
    %c0_8 = arith.constant 0 : index
    %11 = vector.load %arg10[%c0_7, %c0_8] : memref<8x32xf32, #tpu.memory_space<vmem>>, vector<8x32xf32>
    %12 = arith.truncf %10 : vector<8x128xf32> to vector<8x128xbf16>
    %c0_9 = arith.constant 0 : index
    %c0_10 = arith.constant 0 : index
    %13 = vector.load %arg5[%c0_9, %c0_10] : memref<128x32xbf16, #tpu.memory_space<vmem>>, vector<128x32xbf16>
    %cst_11 = arith.constant dense<0.000000e+00> : vector<8x32xf32>
    %14 = tpu.matmul %12, %13, %cst_11 {dimension_numbers = #tpu.dot_dimension_numbers<[1], [0], [0], [1], [0, 0, 1, 1], [], []>} : vector<8x128xbf16>, vector<128x32xbf16>, vector<8x32xf32> -> vector<8x32xf32>
    %15 = arith.addf %11, %14 : vector<8x32xf32>
    %c0_12 = arith.constant 0 : index
    %c0_13 = arith.constant 0 : index
    %16 = vector.load %arg10[%c0_12, %c0_13] : memref<8x32xf32, #tpu.memory_space<vmem>>, vector<8x32xf32>
    tpu.vector_store %arg10[%c0_12, %c0_13], %15 {strides = array<i32>} : memref<8x32xf32, #tpu.memory_space<vmem>>, vector<8x32xf32>,
    %c0_i32_14 = arith.constant 0 : i32
    %17 = arith.cmpi eq, %arg1, %c0_i32_14 : i32
    %18 = arith.extui %17 : i1 to i32
    %c0_i32_15 = arith.constant 0 : i32
    %19 = arith.cmpi ne, %18, %c0_i32_15 : i32
    scf.if %19 {
      %c0_16 = arith.constant 0 : index
      %c0_17 = arith.constant 0 : index
      %20 = vector.load %arg10[%c0_16, %c0_17] : memref<8x32xf32, #tpu.memory_space<vmem>>, vector<8x32xf32>
      %c0_18 = arith.constant 0 : index
      %c0_19 = arith.constant 0 : index
      %21 = vector.load %arg6[%c0_18, %c0_19] : memref<1x32xf32, #tpu.memory_space<vmem>>, vector<1x32xf32>
      %22 = vector.broadcast %21 : vector<1x32xf32> to vector<8x32xf32>
      %23 = arith.addf %20, %22 : vector<8x32xf32>
      %24 = arith.extf %3 : vector<8x32xbf16> to vector<8x32xf32>
      %25 = arith.addf %23, %24 : vector<8x32xf32>
      %c0_20 = arith.constant 0 : index
      %c0_21 = arith.constant 0 : index
      %26 = vector.load %arg7[%c0_20, %c0_21] : memref<1x32xf32, #tpu.memory_space<vmem>>, vector<1x32xf32>
      %c0_22 = arith.constant 0 : index
      %c0_23 = arith.constant 0 : index
      %27 = vector.load %arg8[%c0_22, %c0_23] : memref<1x32xf32, #tpu.memory_space<vmem>>, vector<1x32xf32>
      %cst_24 = arith.constant dense<0.000000e+00> : vector<8xf32>
      %28 = vector.multi_reduction <add>, %25, %cst_24 [1] : vector<8x32xf32> to vector<8xf32>
      %29 = vector.shape_cast %28 : vector<8xf32> to vector<8x1xf32>
      %cst_25 = arith.constant 3.200000e+01 : f32
      %30 = vector.broadcast %cst_25 : f32 to vector<8x1xf32>
      %31 = arith.divf %29, %30 : vector<8x1xf32>
      %32 = vector.broadcast %31 : vector<8x1xf32> to vector<8x32xf32>
      %33 = arith.subf %25, %32 : vector<8x32xf32>
      %34 = arith.mulf %33, %33 : vector<8x32xf32>
      %cst_26 = arith.constant dense<0.000000e+00> : vector<8xf32>
      %35 = vector.multi_reduction <add>, %34, %cst_26 [1] : vector<8x32xf32> to vector<8xf32>
      %36 = vector.shape_cast %35 : vector<8xf32> to vector<8x1xf32>
      %cst_27 = arith.constant 3.200000e+01 : f32
      %37 = vector.broadcast %cst_27 : f32 to vector<8x1xf32>
      %38 = arith.divf %36, %37 : vector<8x1xf32>
      %cst_28 = arith.constant 9.99999974E-6 : f32
      %39 = vector.broadcast %cst_28 : f32 to vector<8x1xf32>
      %40 = arith.addf %38, %39 : vector<8x1xf32>
      %41 = math.rsqrt %40 : vector<8x1xf32>
      %42 = vector.broadcast %41 : vector<8x1xf32> to vector<8x32xf32>
      %43 = arith.mulf %33, %42 : vector<8x32xf32>
      %44 = vector.broadcast %26 : vector<1x32xf32> to vector<8x32xf32>
      %45 = arith.mulf %43, %44 : vector<8x32xf32>
      %46 = vector.broadcast %27 : vector<1x32xf32> to vector<8x32xf32>
      %47 = arith.addf %45, %46 : vector<8x32xf32>
      %48 = arith.truncf %47 : vector<8x32xf32> to vector<8x32xbf16>
      %c0_29 = arith.constant 0 : index
      %c0_30 = arith.constant 0 : index
      %49 = vector.load %arg9[%c0_29, %c0_30] : memref<8x32xbf16, #tpu.memory_space<vmem>>, vector<8x32xbf16>
      tpu.vector_store %arg9[%c0_29, %c0_30], %48 {strides = array<i32>} : memref<8x32xbf16, #tpu.memory_space<vmem>>, vector<8x32xbf16>,
    } else {
    }
    return
  }
  func.func @transform_0(%arg0: i32, %arg1: i32) -> (i32, i32) {
    %c0_i32 = arith.constant 0 : i32
    %c0_i32_0 = arith.constant 0 : i32
    return %arg0, %c0_i32 : i32, i32
  }
  func.func @transform_1(%arg0: i32, %arg1: i32) -> (i32, i32) {
    %c0_i32 = arith.constant 0 : i32
    %c0_i32_0 = arith.constant 0 : i32
    return %c0_i32, %arg1 : i32, i32
  }
  func.func @transform_2(%arg0: i32, %arg1: i32) -> (i32, i32) {
    %c0_i32 = arith.constant 0 : i32
    %c0_i32_0 = arith.constant 0 : i32
    return %c0_i32, %arg1 : i32, i32
  }
  func.func @transform_3(%arg0: i32, %arg1: i32) -> (i32, i32) {
    %c0_i32 = arith.constant 0 : i32
    %c0_i32_0 = arith.constant 0 : i32
    return %arg1, %c0_i32 : i32, i32
  }
  func.func @transform_4(%arg0: i32, %arg1: i32) -> (i32, i32) {
    %c0_i32 = arith.constant 0 : i32
    %c0_i32_0 = arith.constant 0 : i32
    %c0_i32_1 = arith.constant 0 : i32
    return %c0_i32, %c0_i32_0 : i32, i32
  }
  func.func @transform_5(%arg0: i32, %arg1: i32) -> (i32, i32) {
    %c0_i32 = arith.constant 0 : i32
    %c0_i32_0 = arith.constant 0 : i32
    %c0_i32_1 = arith.constant 0 : i32
    return %c0_i32, %c0_i32_0 : i32, i32
  }
  func.func @transform_6(%arg0: i32, %arg1: i32) -> (i32, i32) {
    %c0_i32 = arith.constant 0 : i32
    %c0_i32_0 = arith.constant 0 : i32
    %c0_i32_1 = arith.constant 0 : i32
    return %c0_i32, %c0_i32_0 : i32, i32
  }
  func.func @transform_7(%arg0: i32, %arg1: i32) -> (i32, i32) {
    %c0_i32 = arith.constant 0 : i32
    %c0_i32_0 = arith.constant 0 : i32
    return %arg0, %c0_i32 : i32, i32
  }
}

</mosaic_0001>

<bundles_post_ra>
// kernel: tpu_custom_call.1
= control target key start
LH: loop header
LB: loop body
LE: loop exit
PB: predicated region body
PF: predicated region fallthrough
CT: control target
= control target key end

     0   :  { %6 = vsyncpa [#allocation3], 0  ;;  %s482_s0 = inlined_call_operand.hbm [shape: f32[8,128], index: 0, kind: input, shape index: {}]   ;;  %s483_s1 = inlined_call_operand.hbm [shape: f32[16,128], index: 1, kind: output, shape index: {}]  }
   0x1   :  { %7 = vsyncpa [#allocation4], 0 }
   0x2   :  { %9 = vsyncpa [#allocation4 + $0x1], 0  ;;  %s352_s6 = smov 0   ;;  %s354_s7 = smov 0  }
   0x3   :  { %s356_s8 = smov 0   ;;  %s358_s9 = smov 0  }
   0x4 LB: > { %s373_s10 = sadd.s32 4294967295, %s338_s9   ;;  %s184_s11 = sadd.s32 4294967294, %s338_s9   ;;  %s338_s9 = sphi %s358_s9, %s499_s9   ;;  %s334_s8 = sphi %s356_s8, %s498_s8   ;;  %s330_s7 = sphi %s354_s7, %s497_s7   ;;  %s326_s6 = sphi %s352_s6, %s496_s6  }
   0x5   : > { %s377_s12 = sadd.s32 1, %s338_s9   ;;  %s43_s13 = sadd.s32 1, %s334_s8 }
   0x6   : > { %s40_s14 = ssub.s32 %s338_s9, %s377_s12  ;;  %p53_p0 = scmp.ne.s32.totalorder %s334_s8, %s330_s7 }
   0x7   : > { %p41_p1 = scmp.eq.s32.totalorder %s40_s14, 0  ;;  %p54_p2 = scmp.eq.s32.totalorder %s373_s10, 1 }
   0x8   : > { %p59_p3 = scmp.ne.s32.totalorder %s330_s7, %s326_s6  ;;  %p60_p4 = scmp.eq.s32.totalorder %s184_s11, 1 }
   0x9   : > { %s388_s15 = scalar_select %p41_p1, %s334_s8, %s43_s13  }
   0xa   : > { %p390_p5 = por %p54_p2, %p53_p0  ;;  %p394_p6 = por %p60_p4, %p59_p3 }
   0xb   : > { %p185_p7 = scmp.ge.s32.totalorder %s338_s9, 1  ;;  %p67_p8 = scmp.lt.s32.totalorder %s338_s9, 3 }
   0xc   : > { %s487_s16 = scalar_select %p390_p5, 1, 0 }
   0xd   : > { %s488_s17 = scalar_select %p394_p6, 1, 0 }
   0xe   : > { %p484_p9 = scmp.eq.s32.totalorder %s373_s10, 0  ;;  %p401_p10 = pnand %p185_p7, %p67_p8 }
   0xf   : > { %s340_s19 = smov [#allocation2]   ;;  %s244_s24 = scalar_lea.hbm %s482_s0, 128 }
  0x10   : > { %s489_s18 = scalar_select %p401_p10, 1, 0 }
  0x11   : > { %s80_s20 = sshll.u32 %s340_s19, 4  ;;  %p200_p11 = pneg %p401_p10  ;;  %s81_s20 = int_to_ptr.vmem [resolvable:$true] %s80_s20 }
  0x12   : > { %p245_p13 = scmp.ne.s32.totalorder %s482_s0, %s244_s24  ;;  %p251_p3 = scmp.lt.u32.totalorder %s244_s24, %s482_s0 }
  0x13   : > { %p409_p12 = pnand %p484_p9, %p200_p11 }
  0x15   : > { %p246_p0 = pneg %p409_p12 }
  0x17   : > { %p247_p1 = pnand %p246_p0, %p245_p13 }
  0x19   : > { %p248_p2 = pneg %p247_p1 }
  0x1b   : > { %p253_p4 = pnand %p251_p3, %p248_p2 }
  0x1d   : > { %256 = shalt.err (!%p253_p4)
}
  0x1e   : > { %s257_s29 = scalar_lea.vmem %s81_s20, 128  ;;  %p265_p9 = scmp.lt.s32.totalorder %s81_s20, %s81_s20 }
  0x1f   : > { %p258_p7 = scmp.ne.s32.totalorder %s81_s20, %s257_s29  ;;  %p266_p6 = scmp.lt.s32.totalorder %s257_s29, %s257_s29 }
  0x21   : > { %p260_p8 = pnand %p258_p7, %p246_p0  ;;  %p267_p5 = por %p266_p6, %p265_p9 }
  0x23   : > { %p261_p11 = pneg %p260_p8 }
  0x25   : > { %p268_p10 = pnand %p267_p5, %p261_p11 }
  0x27   : > { %271 = shalt.err (!%p268_p10)
}
  0x28   : > { %203 = dma.hbm_to_vmem [thread:$0]  (!%p409_p12), %s482_s0, 128, %s81_s20, [#allocation3]  }
  0x29   : > { %p491_p13 = scmp.ne.s32.totalorder %s489_s18, 0 }
  0x2a   : > { %p492_p1 = scmp.eq.s32.totalorder (!%p491_p13), %s373_s10, 0 }
  0x2b   : > { %93 = sbr.rel (%p491_p13) target bundleno = 77 (0x4d), region = 24 }
  0x32   : > { %317 = dma.done.wait (%p492_p1), [#allocation3], 128   ;;  %p493_p0 = pmov %p492_p1 }
  0x33   : > { %s105_s3 = sand.u32 1, %s330_s7   ;;  %s191_s13 = sshll.u32 %s373_s10, 7  ;;  %v108_v0 = vld [vmem:[#allocation2] sm:$0xff] }
  0x34   : > { %319 = vsyncadd (%p493_p0), [#allocation3], 4294967168  ;;  %s189_s4 = sshll.u32 %s105_s3, 3  ;;  %v109_v1 = vmul.f32 2.0, %v108_v0  ;;  %s442_s19 = scalar_lea.hbm %s483_s1, %s191_s13 }
  0x35   : > { %s107_s5 = scalar_lea.vmem [#allocation5], %s189_s4  ;;  %s112_s20 = scalar_lea.sflag [#allocation4], %s105_s3 }
  0x36   : > { %s125_s11 = sshll.u32 %s107_s5, 4  ;;  %110 = vst [vmem:[%s107_s5] sm:$0xff] %v109_v1  ;;  %p494_p6 = scmp.ne.s32.totalorder %s487_s16, 0  ;;  %s437_s11 = int_to_ptr.vmem [resolvable:$true] %s125_s11 }
  0x37   : > { %s272_s21 = scalar_lea.vmem %s437_s11, 128  ;;  %s341_s10 = smov [#allocation5]  }
  0x38   : > { %p273_p5 = scmp.ne.s32.totalorder %s437_s11, %s272_s21  ;;  %s276_s22 = sshll.u32 %s341_s10, 4  ;;  %s277_s22 = int_to_ptr.vmem [resolvable:$false] %s276_s22 }
  0x39   : > { %s278_s23 = scalar_lea.vmem %s277_s22, 256  ;;  %p279_p12 = scmp.lt.s32.totalorder %s437_s11, %s277_s22 }
  0x3a   : > { %p274_p9 = pnand %p273_p5, %p494_p6  ;;  %p280_p2 = scmp.lt.s32.totalorder %s278_s23, %s272_s21 }
  0x3c   : > { %p275_p10 = pneg %p274_p9  ;;  %p281_p3 = por %p280_p2, %p279_p12 }
  0x3e   : > { %p282_p4 = pnand %p281_p3, %p275_p10 }
  0x40   : > { %285 = shalt.err (!%p282_p4)
}
  0x41   : > { %s286_s24 = scalar_lea.hbm %s442_s19, 128  ;;  %s290_s27 = scalar_lea.hbm %s483_s1, 256 }
  0x42   : > { %p287_p7 = scmp.ne.s32.totalorder %s442_s19, %s286_s24  ;;  %p291_p13 = scmp.lt.u32.totalorder %s442_s19, %s483_s1 }
  0x43   : > { %p292_p1 = scmp.lt.u32.totalorder %s290_s27, %s286_s24  ;;  %p294_p5 = scmp.lt.u32.totalorder %s286_s24, %s442_s19 }
  0x44   : > { %p288_p8 = pnand %p287_p7, %p494_p6 }
  0x45   : > { %p293_p0 = por %p292_p1, %p291_p13 }
  0x46   : > { %p289_p11 = pneg %p288_p8 }
  0x47   : > { %p295_p9 = por %p294_p5, %p293_p0 }
  0x49   : > { %p296_p10 = pnand %p295_p9, %p289_p11 }
  0x4b   : > { %299 = shalt.err (!%p296_p10)
}
  0x4c   : > { %198 = dma.vmem_to_hbm [thread:$0]  (%p494_p6), %s437_s11, 128, %s442_s19, %s112_s20  }
  0x4d PF: > { %p210_p12 = scmp.ge.s32.totalorder %s338_s9, 2  ;;  %s137_s30 = sand.u32 1, %s326_s6  }
  0x4e   : > { %p495_p2 = scmp.ne.s32.totalorder %s488_s17, 0  ;;  %s138_s2 = scalar_lea.sflag [#allocation4], %s137_s30 }
  0x50   : > { %p205_p3 = pnand %p210_p12, %p495_p2 }
  0x52   : > { %321 = dma.done.wait (!%p205_p3), %s138_s2, 128  }
  0x53   : > { %323 = vsyncadd (!%p205_p3), %s138_s2, 4294967168  ;;  %p12_p4 = scmp.ge.s32.totalorder %s377_s12, 4   ;;  %s496_s6 = smov %s330_s7 }
  0x54   : > { %s497_s7 = smov %s334_s8  ;;  %s498_s8 = smov %s388_s15 }
  0x55   : > { %s499_s9 = smov %s377_s12  ;;  %14 = sbr.rel (!%p12_p4) target bundleno = 4 (0x4), region = 61 }
  0x5c   :  { %143 = vsyncpa [#allocation3], 1 }
  0x5d   :  { %145 = vsyncpa [#allocation3 + $0x1], 1 }
  0x5e   :  { %146 = vsyncpa [#allocation4], 1 }
  0x5f   :  { %148 = vsyncpa [#allocation4 + $0x1], 1 }

// kernel: decoder_forward.6
= control target key start
LH: loop header
LB: loop body
LE: loop exit
PB: predicated region body
PF: predicated region fallthrough
CT: control target
= control target key end

     0   :  { %s1604_s24 = smov 0   ;;  %s1793_s0 = inlined_call_operand.vmem [shape: bf16[2,8,32], index: 0, kind: input, shape index: {}]   ;;  %s1794_s1 = inlined_call_operand.vmem [shape: bf16[96,32], index: 1, kind: input, shape index: {}]   ;;  %s1795_s2 = inlined_call_operand.vmem [shape: f32[96,1], index: 2, kind: input, shape index: {}]   ;;  %s1796_s3 = inlined_call_operand.vmem [shape: bf16[4,8,32], index: 3, kind: input, shape index: {}]   ;;  %s1797_s4 = inlined_call_operand.vmem [shape: f32[1,32], index: 4, kind: input, shape index: {}]   ;;  %s1798_s5 = inlined_call_operand.vmem [shape: f32[1,32], index: 5, kind: input, shape index: {}]   ;;  %s1799_s6 = inlined_call_operand.vmem [shape: f32[1,32], index: 6, kind: input, shape index: {}]   ;;  %s1800_s7 = inlined_call_operand.vmem [shape: bf16[2,8,32], index: 7, kind: output, shape index: {}]  }
   0x1 LB: > { %s1360_s25 = sadd.s32 4294967295, %s1558_s24   ;;  %p1364_p0 = scmp.ge.s32.totalorder %s1558_s24, 1  ;;  %s1558_s24 = sphi %s1604_s24, %s17_s24  }
   0x2   : > { %p236_p1 = scmp.lt.s32.totalorder %s1558_s24, 3 }
   0x4   : > { %p237_p2 = pnand %p1364_p0, %p236_p1 }
   0x5   : > { %p266_p3 = scmp.lt.s32.totalorder (!%p237_p2), %s1360_s25, 1  ;;  %v1528_v0 = vld [vmem:[%s1794_s1] sm:$0xff] (!%p237_p2)   ;;  %vm403_vm0 = vcmask (!%p237_p2), 261120   ;;  %v1560_v1 = vmov (!%p237_p2), 0   ;;  %v295_v3 = vld [vmem:[%s1795_s2 + $0x10] sm:$0xff] (!%p237_p2)  ;;  %v294_v5 = vld [vmem:[%s1795_s2 + $0x8] sm:$0xff] (!%p237_p2)  ;;  %v275_v58 = vlaneseq (!%p237_p2) }
   0x6   : > { %240 = sbr.rel (%p237_p2) target bundleno = 1677 (0x68d), region = 48  ;;  %1526 = vset.pattern.permute.xlu0 (!%p237_p2), %v1560_v1  ;;  %1527 = vset.pattern.permute.xlu1 (!%p237_p2), %v1560_v1  ;;  %v293_v2 = vld [vmem:[%s1795_s2] sm:$0xff] (!%p237_p2)  ;;  %v296_v7 = vld [vmem:[%s1795_s2 + $0x18] sm:$0xff] (!%p237_p2)  ;;  %v1529_v9 = vld [vmem:[%s1794_s1 + $0x8] sm:$0xff] (!%p237_p2)   ;;  %v1561_v15 = vmov (!%p237_p2), 0.0   ;;  %vm1562_vm1 = vmmov (!%p237_p2), 0  }
   0x7   : > { %1429 = vmatprep.mubr.msk.bf16.mxu0 (!%p237_p2), %vm403_vm0, %v1528_v0  ;;  %315 = vperm.xlu0 (!%p237_p2), %1526, %v293_v2   ;;  %v297_v8 = vld [vmem:[%s1795_s2 + $0x20] sm:$0xff] (!%p237_p2)  ;;  %v298_v10 = vld [vmem:[%s1795_s2 + $0x28] sm:$0xff] (!%p237_p2)  ;;  %v1530_v11 = vld [vmem:[%s1794_s1 + $0x10] sm:$0xff] (!%p237_p2)   ;;  %vm650_vm2 = vcmask (!%p237_p2), 1043456   ;;  %vm646_vm3 = vcmask (!%p237_p2), 64512   ;;  %v276_v59 = vshrl.u32 (!%p237_p2), %v275_v58, 7 }
   0x8   : > { %325 = vperm.xlu1 (!%p237_p2), %1527, %v295_v3   ;;  %v299_v12 = vld [vmem:[%s1795_s2 + $0x30] sm:$0xff] (!%p237_p2)  ;;  %v300_v13 = vld [vmem:[%s1795_s2 + $0x38] sm:$0xff] (!%p237_p2)  ;;  %1441 = vmatprep.subr.bf16.mxu1 (!%p237_p2), %v1561_v15  ;;  %v1532_v36 = vld [vmem:[%s1794_s1 + $0x20] sm:$0xff] (!%p237_p2)   ;;  %v278_v60 = vand.u32 (!%p237_p2), 127, %v275_v58  ;;  %v1563_v62 = vmov (!%p237_p2), -1e+09  }
   0x9   : > { %v1531_v14 = vld [vmem:[%s1794_s1 + $0x18] sm:$0xff] (!%p237_p2)   ;;  %1443 = vmatprep.mubr.msk.bf16.mxu1 (!%p237_p2), %vm1562_vm1, %v1561_v15  ;;  %v1533_v37 = vld [vmem:[%s1794_s1 + $0x28] sm:$0xff] (!%p237_p2)   ;;  %vm1305_vm5 = vcmask (!%p237_p2), 257024  }
   0xa   : > { %vm279_vm4 = vcmp.le.s32.totalorder (!%p237_p2), %v278_v60, %v276_v59 }
   0xb   : > { %320 = vperm.xlu0 (!%p237_p2), %1526, %v294_v5   ;;  %v280_v63 = vsel (!%p237_p2), %vm279_vm4, 0.0, %v1563_v62 }
   0xc   : > { %330 = vperm.xlu1 (!%p237_p2), %1527, %v296_v7  }
   0xd   : > { %s1802_s25 = smov (!%p266_p3, %s1360_s25), 1 }
   0xe   : > { %s1365_s28 = sshll.u32 %s1802_s25, 2 }
   0xf   : > { %s269_s10 = scalar_lea.vmem %s1793_s0, %s1365_s28  ;;  %335 = vperm.xlu0 %1526, %v297_v8   ;;  %s273_s19 = scalar_lea.vmem %s1800_s7, %s1365_s28 }
  0x10   : > { %v1630_v4 = vld [vmem:[%s269_s10] sm:$0xf]  ;;  %340 = vperm.xlu1 %1527, %v298_v10  }
  0x11   : > { %1513 = vmatprep.subr.msk.bf16.mxu0 %vm403_vm0, %v1630_v4  ;;  %v423_v6 = vsel %vm403_vm0, %v1630_v4, 0 }
  0x12   : > { %1428 = vmatpush3.bf16.xpose.msra.mxu0 %v423_v6 }
  0x13   : > { %345 = vperm.xlu0 %1526, %v299_v12   ;;  %1465 = vmatprep.subr.bf16.mxu0 %v1561_v15 }
  0x14   : > { %350 = vperm.xlu1 %1527, %v300_v13  }
  0x19   : > { %1430 = vmatmul.mubr.msk.bf16.vlgmr.msra.gmra.mrb[0].mxu0 %vm403_vm0, %v1529_v9 }
  0x1a   : > { %1433 = vmatprep.mubr.msk.bf16.mxu0 %vm403_vm0, %v1530_v11 }
  0x21   : > { %1434 = vmatmul.mubr.msk.bf16.gmra.mrb[4].mxu0 %vm403_vm0, %v1531_v14 }
  0x22   : > { %1437 = vmatprep.mubr.msk.bf16.mxu0 %vm403_vm0, %v1532_v36 }
  0x29   : > { %1438 = vmatmul.mubr.msk.bf16.gmra.mrb[8].mxu0 %vm403_vm0, %v1533_v37 }
  0x2a   : > { %1467 = vmatprep.mubr.msk.bf16.mxu0 %vm1562_vm1, %v1561_v15 }
  0x86   : > { %v316_v16 = vpop.permute.xlu0 %315 }
  0x87   : > { %v326_v18 = vpop.permute.xlu1 %325 }
  0x8a   : > { %v321_v22 = vpop.permute.xlu0 %320 }
  0x8b   : > { %v331_v26 = vpop.permute.xlu1 %330 }
  0x8e   : > { %v336_v28 = vpop.permute.xlu0 %335 }
  0x8f   : > { %v341_v38 = vpop.permute.xlu1 %340 }
  0x92   : > { %v346_v40 = vpop.permute.xlu0 %345 }
  0x93   : > { %v351_v42 = vpop.permute.xlu1 %350 }
  0xec   : > { %v1431_v17 = vpop.f32.mrb[0].mxu0 }
  0xed   : > { %v459_v19 = vpop.f32.mrb[1].mxu0  ;;  %v468_v25 = vadd.f32 %v1431_v17, %v326_v18 }
  0xee   : > { %v460_v20 = vadd.f32 %v459_v19, %v316_v16  ;;  %v1432_v21 = vpop.f32.mrb[2].mxu0 }
  0xef   : > { %v462_v23 = vpop.f32.mrb[3].mxu0  ;;  %v471_v30 = vadd.f32 %v1432_v21, %v331_v26 }
  0xf0   : > { %v463_v24 = vadd.f32 %v462_v23, %v321_v22  ;;  %506 = vxpose.xlu0.b32.start.end [1/1] (short) (narrow) %v460_v20, 8 }
  0xf2   : > { %538 = vxpose.xlu1.b32.start.end [1/1] (short) (narrow) %v463_v24, 8 }
  0xf4   : > { %v1435_v27 = vpop.f32.mrb[4].mxu0  ;;  %570 = vxpose.xlu0.b32.start.end [1/1] (short) (narrow) %v468_v25, 8 }
  0xf5   : > { %v475_v29 = vpop.f32.mrb[5].mxu0  ;;  %v484_v45 = vadd.f32 %v1435_v27, %v346_v40 }
  0xf6   : > { %v476_v31 = vadd.f32 %v475_v29, %v336_v28  ;;  %v1436_v32 = vpop.f32.mrb[6].mxu0  ;;  %v302_v29 = vld [vmem:[%s1795_s2 + $0x48] sm:$0xff] }
  0xf7   : > { %v478_v33 = vpop.f32.mrb[7].mxu0  ;;  %v640_v48 = vpack.c.bf16 %v484_v45, %v484_v45  ;;  %v487_v51 = vadd.f32 %v1436_v32, %v351_v42 }
  0xf8   : > { %v638_v34 = vpack.c.bf16 %v476_v31, %v476_v31  ;;  %602 = vxpose.xlu0.b32.start.end [1/1] (short) (narrow) %v471_v30, 8  ;;  %v479_v39 = vadd.f32 %v478_v33, %v341_v38 }
  0xf9   : > { %v744_v50 = vsel %vm650_vm2, %v640_v48, 0  ;;  %v641_v53 = vpack.c.bf16 %v487_v51, %v487_v51 }
  0xfa   : > { %v652_v35 = vsel %vm650_vm2, %v638_v34, 0  ;;  %v639_v41 = vpack.c.bf16 %v479_v39, %v479_v39  ;;  %v301_v34 = vld [vmem:[%s1795_s2 + $0x40] sm:$0xff] }
  0xfb   : > { %1442 = vmatpush3.bf16.msra.mxu1 %v652_v35  ;;  %v790_v55 = vsel %vm650_vm2, %v641_v53, 0 }
  0xfc   : > { %1447 = vmatprep.subr.bf16.mxu1 %v1561_v15  ;;  %v698_v46 = vsel %vm650_vm2, %v639_v41, 0  ;;  %v1439_v30 = vpop.f32.mrb[8].mxu0 }
  0xfd   : > { %v491_v31 = vpop.f32.mrb[9].mxu0 }
  0xfe   : > { %v1707_v32 = vpop.f32.mrb[10].mxu0 }
  0xff   : > { %v494_v33 = vpop.f32.mrb[11].mxu0 }
 0x170   : > { %v522_v43 = vpop.trf.xlu0 }
 0x171   : > { %v634_v44 = vpack.c.bf16 %v522_v43, %v522_v43 }
 0x172   : > { %v554_v47 = vpop.trf.xlu1 }
 0x173   : > { %1444 = vmatmul.mubr.msk.bf16.vlgmr.msra.gmra.mrb[0].mxu1 %vm646_vm3, %v634_v44  ;;  %v635_v49 = vpack.c.bf16 %v554_v47, %v554_v47 }
 0x174   : > { %1448 = vmatpush3.bf16.msra.mxu1 %v698_v46  ;;  %1449 = vmatprep.mubr.msk.bf16.mxu1 %vm1562_vm1, %v1561_v15  ;;  %v586_v52 = vpop.trf.xlu0 }
 0x175   : > { %1453 = vmatprep.subr.bf16.mxu1 %v1561_v15  ;;  %v636_v54 = vpack.c.bf16 %v586_v52, %v586_v52 }
 0x178   : > { %v618_v56 = vpop.trf.xlu0 }
 0x179   : > { %v637_v57 = vpack.c.bf16 %v618_v56, %v618_v56 }
 0x17b   : > { %1450 = vmatmul.mubr.msk.bf16.vlgmr.msra.gmra.mrb[4].mxu1 %vm646_vm3, %v635_v49 }
 0x17c   : > { %1454 = vmatpush3.bf16.msra.mxu1 %v744_v50  ;;  %1455 = vmatprep.mubr.msk.bf16.mxu1 %vm1562_vm1, %v1561_v15 }
 0x17d   : > { %1459 = vmatprep.subr.bf16.mxu1 %v1561_v15 }
 0x183   : > { %1456 = vmatmul.mubr.msk.bf16.vlgmr.msra.gmra.mrb[8].mxu1 %vm646_vm3, %v636_v54 }
 0x184   : > { %1460 = vmatpush3.bf16.msra.mxu1 %v790_v55  ;;  %1461 = vmatprep.mubr.msk.bf16.mxu1 %vm1562_vm1, %v1561_v15 }
 0x185   : > { %1471 = vmatprep.subr.bf16.mxu1 %v1561_v15 }
 0x18b   : > { %1462 = vmatmul.mubr.msk.bf16.vlgmr.msra.gmra.mrb[12].mxu1 %vm646_vm3, %v637_v57 }
 0x18c   : > { %1473 = vmatprep.mubr.msk.bf16.mxu1 %vm1562_vm1, %v1561_v15 }
 0x246   : > { %v688_v61 = vpop.f32.mrb[0].mxu1 }
 0x247   : > { %v832_v0 = vmul.f32 0.35355338, %v688_v61  ;;  %v1445_v1 = vpop.f32.mrb[1].mxu1 }
 0x248   : > { %v691_v2 = vpop.f32.mrb[2].mxu1 }
 0x249   : > { %v1446_v3 = vpop.f32.mrb[3].mxu1  ;;  %v836_v5 = vadd.f32 %v832_v0, %v280_v63  ;;  %v304_v0 = vld [vmem:[%s1795_s2 + $0x58] sm:$0xff] }
 0x24b   : > { %v840_v6 = vsel %vm646_vm3, %v836_v5, -inf }
 0x24c   : > { %841 = vmax.xlane.f32.xlu0 %v840_v6 }
 0x24e   : > { %v734_v7 = vpop.f32.mrb[4].mxu1 }
 0x24f   : > { %v833_v8 = vmul.f32 0.35355338, %v734_v7  ;;  %v1451_v9 = vpop.f32.mrb[5].mxu1 }
 0x250   : > { %v737_v10 = vpop.f32.mrb[6].mxu1 }
 0x251   : > { %v1452_v11 = vpop.f32.mrb[7].mxu1  ;;  %v837_v12 = vadd.f32 %v833_v8, %v280_v63 }
 0x253   : > { %v843_v13 = vsel %vm646_vm3, %v837_v12, -inf }
 0x254   : > { %844 = vmax.xlane.f32.xlu1 %v843_v13 }
 0x256   : > { %v780_v14 = vpop.f32.mrb[8].mxu1 }
 0x257   : > { %v834_v16 = vmul.f32 0.35355338, %v780_v14  ;;  %v1457_v17 = vpop.f32.mrb[9].mxu1 }
 0x258   : > { %v783_v18 = vpop.f32.mrb[10].mxu1 }
 0x259   : > { %v1458_v19 = vpop.f32.mrb[11].mxu1  ;;  %v838_v20 = vadd.f32 %v834_v16, %v280_v63 }
 0x25b   : > { %v846_v21 = vsel %vm646_vm3, %v838_v20, -inf }
 0x25c   : > { %847 = vmax.xlane.f32.xlu1 %v846_v21 }
 0x25e   : > { %v826_v22 = vpop.f32.mrb[12].mxu1 }
 0x25f   : > { %v835_v23 = vmul.f32 0.35355338, %v826_v22  ;;  %v1463_v24 = vpop.f32.mrb[13].mxu1 }
 0x260   : > { %v829_v25 = vpop.f32.mrb[14].mxu1 }
 0x261   : > { %v1464_v26 = vpop.f32.mrb[15].mxu1  ;;  %v839_v27 = vadd.f32 %v835_v23, %v280_v63  ;;  %v303_v63 = vld [vmem:[%s1795_s2 + $0x50] sm:$0xff] }
 0x263   : > { %v849_v28 = vsel %vm646_vm3, %v839_v27, -inf }
 0x264   : > { %850 = vmax.xlane.f32.xlu0 %v849_v28 }
 0x26d   : > { %360 = vperm.xlu1 %1527, %v302_v29   ;;  %v306_v29 = vld [vmem:[%s1796_s3 + $0x4] sm:$0xf] }
 0x27a   : > { %355 = vperm.xlu0 %1526, %v301_v34  }
 0x2d9   : > { %v842_v35 = vpop.xlane.xlu0 %841 }
 0x2da   : > { %v852_v36 = vsub.f32 %v836_v5, %v842_v35 }
 0x2dc   : > { %v856_v37 = vmul.f32 1.442695, %v852_v36 }
 0x2de   : > { %1534 = vpow2.f32 %v856_v37 }
 0x2e1   : > { %v845_v38 = vpop.xlane.xlu1 %844 }
 0x2e2   : > { %v853_v39 = vsub.f32 %v837_v12, %v845_v38  ;;  %v308_v38 = vld [vmem:[%s1796_s3 + $0xc] sm:$0xf] }
 0x2e4   : > { %v858_v40 = vmul.f32 1.442695, %v853_v39 }
 0x2e6   : > { %1536 = vpow2.f32 %v858_v40 }
 0x2e8   : > { %v1535_v41 = vpop.eup %1534 }
 0x2e9   : > { %v848_v42 = vpop.xlane.xlu1 %847  ;;  %v864_v43 = vsel %vm646_vm3, %v1535_v41, 0.0 }
 0x2ea   : > { %v854_v44 = vsub.f32 %v838_v20, %v848_v42  ;;  %865 = vadd.xlane.f32.xlu1 %v864_v43  ;;  %v1218_v42 = vsel %vm650_vm2, %v308_v38, 0 }
 0x2ec   : > { %v860_v45 = vmul.f32 1.442695, %v854_v44 }
 0x2ed   : > { %v361_v46 = vpop.permute.xlu1 %360 }
 0x2ee   : > { %1538 = vpow2.f32 %v860_v45  ;;  %v495_v47 = vadd.f32 %v494_v33, %v361_v46 }
 0x2f0   : > { %v1537_v48 = vpop.eup %1536  ;;  %v643_v49 = vpack.c.bf16 %v495_v47, %v495_v47 }
 0x2f1   : > { %v851_v50 = vpop.xlane.xlu0 %850  ;;  %v867_v51 = vsel %vm646_vm3, %v1537_v48, 0.0 }
 0x2f2   : > { %v938_v52 = vsel %vm646_vm3, %v643_v49, 0  ;;  %v855_v53 = vsub.f32 %v839_v27, %v851_v50  ;;  %868 = vadd.xlane.f32.xlu0 %v867_v51  ;;  %v305_v27 = vld [vmem:[%s1796_s3] sm:$0xf] }
 0x2f3   : > { %1472 = vmatpush3.bf16.xpose.msra.mxu1 %v938_v52  ;;  %v1080_v28 = vsel %vm650_vm2, %v305_v27, 0 }
 0x2f4   : > { %v862_v54 = vmul.f32 1.442695, %v855_v53  ;;  %1483 = vmatprep.subr.bf16.mxu1 %v1561_v15 }
 0x2f6   : > { %1540 = vpow2.f32 %v862_v54 }
 0x2f8   : > { %v1539_v55 = vpop.eup %1538 }
 0x2f9   : > { %v356_v56 = vpop.permute.xlu0 %355  ;;  %v870_v57 = vsel %vm646_vm3, %v1539_v55, 0.0 }
 0x2fa   : > { %v492_v58 = vadd.f32 %v491_v31, %v356_v56  ;;  %871 = vadd.xlane.f32.xlu1 %v870_v57  ;;  %v307_v31 = vld [vmem:[%s1796_s3 + $0x8] sm:$0xf] }
 0x2fb   : > { %v1172_v35 = vsel %vm650_vm2, %v307_v31, 0 }
 0x2fc   : > { %v642_v59 = vpack.c.bf16 %v492_v58, %v492_v58 }
 0x2fe   : > { %v892_v60 = vsel %vm646_vm3, %v642_v59, 0 }
 0x2ff   : > { %1466 = vmatpush3.bf16.xpose.msra.mxu0 %v892_v60 }
 0x300   : > { %v1541_v61 = vpop.eup %1540  ;;  %1477 = vmatprep.subr.bf16.mxu0 %v1561_v15 }
 0x301   : > { %v873_v62 = vsel %vm646_vm3, %v1541_v61, 0.0 }
 0x302   : > { %874 = vadd.xlane.f32.xlu1 %v873_v62 }
 0x308   : > { %365 = vperm.xlu0 %1526, %v303_v63  }
 0x313   : > { %370 = vperm.xlu1 %1527, %v304_v0  }
 0x377   : > { %v866_v1 = vpop.xlane.xlu1 %865 }
 0x378   : > { %1542 = vrcp.f32 %v866_v1 }
 0x37f   : > { %v869_v2 = vpop.xlane.xlu0 %868 }
 0x380   : > { %1544 = vrcp.f32 %v869_v2 }
 0x382   : > { %v1543_v3 = vpop.eup %1542 }
 0x383   : > { %v880_v5 = vmul.f32 %v1543_v3, %v1535_v41 }
 0x385   : > { %v884_v6 = vpack.c.bf16 %v880_v5, %v880_v5 }
 0x387   : > { %v872_v7 = vpop.xlane.xlu1 %871  ;;  %1468 = vmatmul.mubr.msk.bf16.vlgmr.msra.gmra.mrb[12].mxu0 %vm646_vm3, %v884_v6  ;;  %v366_v8 = vpop.permute.xlu0 %365 }
 0x388   : > { %1546 = vrcp.f32 %v872_v7  ;;  %v500_v9 = vadd.f32 %v1439_v30, %v366_v8  ;;  %1479 = vmatprep.mubr.msk.bf16.mxu0 %vm1562_vm1, %v1561_v15  ;;  %v1126_v30 = vsel %vm650_vm2, %v306_v29, 0 }
 0x38a   : > { %v1545_v10 = vpop.eup %1544  ;;  %v644_v11 = vpack.c.bf16 %v500_v9, %v500_v9  ;;  %v1391_v9 = vld [vmem:[%s1797_s4] ss:$0 sm:$0xff] }
 0x38b   : > { %v881_v12 = vmul.f32 %v1545_v10, %v1537_v48 }
 0x38c   : > { %v984_v13 = vsel %vm646_vm3, %v644_v11, 0 }
 0x38d   : > { %1478 = vmatpush3.bf16.xpose.msra.mxu0 %v984_v13  ;;  %v885_v14 = vpack.c.bf16 %v881_v12, %v881_v12  ;;  %v1274_v12 = vunpack.c.l.bf16 %v1630_v4 }
 0x38e   : > { %1489 = vmatprep.subr.bf16.mxu0 %v1561_v15 }
 0x38f   : > { %v875_v16 = vpop.xlane.xlu1 %874  ;;  %1474 = vmatmul.mubr.msk.bf16.vlgmr.msra.gmra.mrb[16].mxu1 %vm646_vm3, %v885_v14 }
 0x390   : > { %1548 = vrcp.f32 %v875_v16  ;;  %1485 = vmatprep.mubr.msk.bf16.mxu1 %vm1562_vm1, %v1561_v15 }
 0x392   : > { %v1547_v17 = vpop.eup %1546 }
 0x393   : > { %v882_v18 = vmul.f32 %v1547_v17, %v1539_v55  ;;  %v371_v19 = vpop.permute.xlu1 %370 }
 0x394   : > { %v503_v20 = vadd.f32 %v1707_v32, %v371_v19 }
 0x395   : > { %v886_v21 = vpack.c.bf16 %v882_v18, %v882_v18 }
 0x396   : > { %v645_v22 = vpack.c.bf16 %v503_v20, %v503_v20 }
 0x397   : > { %1480 = vmatmul.mubr.msk.bf16.vlgmr.msra.gmra.mrb[16].mxu0 %vm646_vm3, %v886_v21 }
 0x398   : > { %v1030_v23 = vsel %vm646_vm3, %v645_v22, 0  ;;  %1491 = vmatprep.mubr.msk.bf16.mxu0 %vm1562_vm1, %v1561_v15  ;;  %1490 = vmatpush3.bf16.msra.mxu0 %v1080_v28  ;;  %v1392_v28 = vld [vmem:[%s1798_s5] ss:$0 sm:$0xff] }
 0x399   : > { %1484 = vmatpush3.bf16.xpose.msra.mxu1 %v1030_v23  ;;  %1501 = vmatprep.subr.bf16.mxu0 %v1561_v15 }
 0x39a   : > { %v1549_v24 = vpop.eup %1548  ;;  %1495 = vmatprep.subr.bf16.mxu1 %v1561_v15 }
 0x39b   : > { %v883_v25 = vmul.f32 %v1549_v24, %v1541_v61 }
 0x39d   : > { %v887_v26 = vpack.c.bf16 %v883_v25, %v883_v25 }
 0x3a0   : > { %1486 = vmatmul.mubr.msk.bf16.vlgmr.msra.gmra.mrb[20].mxu1 %vm646_vm3, %v887_v26 }
 0x3a1   : > { %1497 = vmatprep.mubr.msk.bf16.mxu1 %vm1562_vm1, %v1561_v15  ;;  %1496 = vmatpush3.bf16.msra.mxu1 %v1126_v30  ;;  %v1393_v30 = vld [vmem:[%s1799_s6] ss:$0 sm:$0xff] }
 0x3a2   : > { %1507 = vmatprep.subr.bf16.mxu1 %v1561_v15 }
 0x45a   : > { %v928_v32 = vpop.f32.mrb[12].mxu0 }
 0x45b   : > { %v1072_v33 = vpack.c.bf16 %v928_v32, %v928_v32  ;;  %v1469_v34 = vpop.f32.mrb[13].mxu0 }
 0x45c   : > { %v931_v36 = vpop.f32.mrb[14].mxu0 }
 0x45d   : > { %v1470_v37 = vpop.f32.mrb[15].mxu0  ;;  %1492 = vmatmul.mubr.msk.bf16.vlgmr.msra.gmra.mrb[20].mxu0 %vm646_vm3, %v1072_v33 }
 0x45e   : > { %1502 = vmatpush3.bf16.msra.mxu0 %v1172_v35  ;;  %1503 = vmatprep.mubr.msk.bf16.mxu0 %vm1562_vm1, %v1561_v15 }
 0x462   : > { %v974_v39 = vpop.f32.mrb[16].mxu1 }
 0x463   : > { %v1073_v40 = vpack.c.bf16 %v974_v39, %v974_v39  ;;  %v1475_v41 = vpop.f32.mrb[17].mxu1 }
 0x464   : > { %v977_v43 = vpop.f32.mrb[18].mxu1 }
 0x465   : > { %v1476_v44 = vpop.f32.mrb[19].mxu1  ;;  %1498 = vmatmul.mubr.msk.bf16.vlgmr.msra.gmra.mrb[24].mxu1 %vm646_vm3, %v1073_v40 }
 0x466   : > { %1508 = vmatpush3.bf16.msra.mxu1 %v1218_v42  ;;  %1509 = vmatprep.mubr.msk.bf16.mxu1 %vm1562_vm1, %v1561_v15 }
 0x46a   : > { %v1020_v45 = vpop.f32.mrb[16].mxu0 }
 0x46b   : > { %v1074_v46 = vpack.c.bf16 %v1020_v45, %v1020_v45  ;;  %v1481_v47 = vpop.f32.mrb[17].mxu0 }
 0x46c   : > { %v1023_v48 = vpop.f32.mrb[18].mxu0 }
 0x46d   : > { %v1482_v49 = vpop.f32.mrb[19].mxu0  ;;  %1504 = vmatmul.mubr.msk.bf16.vlgmr.msra.gmra.mrb[24].mxu0 %vm646_vm3, %v1074_v46 }
 0x473   : > { %v1066_v50 = vpop.f32.mrb[20].mxu1 }
 0x474   : > { %v1075_v51 = vpack.c.bf16 %v1066_v50, %v1066_v50  ;;  %v1487_v52 = vpop.f32.mrb[21].mxu1 }
 0x475   : > { %v1069_v53 = vpop.f32.mrb[22].mxu1 }
 0x476   : > { %v1488_v54 = vpop.f32.mrb[23].mxu1  ;;  %1510 = vmatmul.mubr.msk.bf16.vlgmr.msra.gmra.mrb[28].mxu1 %vm646_vm3, %v1075_v51 }
 0x530   : > { %v1116_v55 = vpop.f32.mrb[20].mxu0 }
 0x531   : > { %v1493_v56 = vpop.f32.mrb[21].mxu0  ;;  %v1260_v15 = vsel %vm403_vm0, %v1116_v55, 0.0 }
 0x532   : > { %v1119_v57 = vpop.f32.mrb[22].mxu0 }
 0x533   : > { %v1494_v58 = vpop.f32.mrb[23].mxu0 }
 0x538   : > { %v1162_v59 = vpop.f32.mrb[24].mxu1 }
 0x539   : > { %v1261_v60 = vsel %vm403_vm0, %v1162_v59, 0.0  ;;  %v1499_v61 = vpop.f32.mrb[25].mxu1 }
 0x53a   : > { %v1262_v62 = vadd.f32 %v1261_v60, %v1260_v15  ;;  %v1165_v63 = vpop.f32.mrb[26].mxu1 }
 0x53b   : > { %v1500_v0 = vpop.f32.mrb[27].mxu1 }
 0x540   : > { %v1208_v1 = vpop.f32.mrb[24].mxu0 }
 0x541   : > { %v1263_v2 = vsel %vm403_vm0, %v1208_v1, 0.0  ;;  %v1505_v3 = vpop.f32.mrb[25].mxu0 }
 0x542   : > { %v1264_v5 = vadd.f32 %v1263_v2, %v1262_v62  ;;  %v1211_v6 = vpop.f32.mrb[26].mxu0 }
 0x543   : > { %v1506_v7 = vpop.f32.mrb[27].mxu0 }
 0x549   : > { %v1254_v8 = vpop.f32.mrb[28].mxu1 }
 0x54a   : > { %v1265_v10 = vsel %vm403_vm0, %v1254_v8, 0.0  ;;  %v1511_v11 = vpop.f32.mrb[29].mxu1 }
 0x54b   : > { %v1266_v13 = vadd.f32 %v1265_v10, %v1264_v5  ;;  %v1257_v14 = vpop.f32.mrb[30].mxu1 }
 0x54c   : > { %v1512_v16 = vpop.f32.mrb[31].mxu1 }
 0x54d   : > { %v1273_v17 = vadd.f32 %v1391_v9, %v1266_v13 }
 0x54f   : > { %v1275_v18 = vadd.f32 %v1274_v12, %v1273_v17 }
 0x551   : > { %v1276_v19 = vsel %vm403_vm0, %v1275_v18, 0.0 }
 0x552   : > { %1277 = vadd.xlane.f32.xlu0 %v1276_v19 }
 0x5df   : > { %v1278_v20 = vpop.xlane.xlu0 %1277 }
 0x5e0   : > { %v1280_v21 = vmul.f32 0.03125, %v1278_v20 }
 0x5e2   : > { %v1281_v22 = vsub.f32 %v1275_v18, %v1280_v21 }
 0x5e4   : > { %v1282_v23 = vmul.f32 %v1281_v22, %v1281_v22 }
 0x5e6   : > { %v1283_v24 = vsel %vm403_vm0, %v1282_v23, 0.0 }
 0x5e7   : > { %1284 = vadd.xlane.f32.xlu1 %v1283_v24 }
 0x674   : > { %v1285_v25 = vpop.xlane.xlu1 %1284 }
 0x675   : > { %v1286_v26 = vmul.f32 0.03125, %v1285_v25 }
 0x677   : > { %v1287_v27 = vadd.f32 1e-05, %v1286_v26 }
 0x679   : > { %1550 = vrsqrt.f32 %v1287_v27 }
 0x683   : > { %v1551_v4 = vpop.eup %1550 }
 0x684   : > { %v1289_v29 = vmul.f32 %v1551_v4, %v1281_v22 }
 0x686   : > { %v1296_v31 = vmul.f32 %v1392_v28, %v1289_v29 }
 0x688   : > { %v1303_v32 = vadd.f32 %v1393_v30, %v1296_v31 }
 0x68a   : > { %v1304_v33 = vpack.c.bf16 %v1303_v32, %v1303_v32 }
 0x68c   : > { %1306 = vst.msk [vmem:[%s273_s19] sm:$0xf] %vm1305_vm5, %v1304_v33 }
 0x68d PF: > { %s17_s24 = sadd.s32 1, %s1558_s24  }
 0x68e   : > { %p14_p4 = scmp.ge.s32.totalorder %s17_s24, 4  }
 0x690   :  { %16 = sbr.rel (!%p14_p4) target bundleno = 1 (0x1), region = 78 }

// kernel: decoder_forward.7
= control target key start
LH: loop header
LB: loop body
LE: loop exit
PB: predicated region body
PF: predicated region fallthrough
CT: control target
= control target key end

     0   :  { %s1759_s13 = smov 0   ;;  %s1954_s0 = inlined_call_operand.vmem [shape: bf16[2,8,32], index: 0, kind: input, shape index: {}]   ;;  %s1955_s1 = inlined_call_operand.vmem [shape: bf16[2,8,32], index: 1, kind: input, shape index: {}]   ;;  %s1956_s2 = inlined_call_operand.vmem [shape: bf16[32,32], index: 2, kind: input, shape index: {}]   ;;  %s1957_s3 = inlined_call_operand.vmem [shape: f32[32,1], index: 3, kind: input, shape index: {}]   ;;  %s1958_s4 = inlined_call_operand.vmem [shape: bf16[64,32], index: 4, kind: input, shape index: {}]   ;;  %s1959_s5 = inlined_call_operand.vmem [shape: f32[64,1], index: 5, kind: input, shape index: {}]   ;;  %s1960_s6 = inlined_call_operand.vmem [shape: bf16[4,8,32], index: 6, kind: input, shape index: {}]   ;;  %s1961_s7 = inlined_call_operand.vmem [shape: f32[1,32], index: 7, kind: input, shape index: {}]   ;;  %s1962_s8 = inlined_call_operand.vmem [shape: f32[1,32], index: 8, kind: input, shape index: {}]   ;;  %s1963_s9 = inlined_call_operand.vmem [shape: f32[1,32], index: 9, kind: input, shape index: {}]   ;;  %s1964_s10 = inlined_call_operand.vmem [shape: bf16[2,8,32], index: 10, kind: output, shape index: {}]  }
   0x1 LB: > { %s1497_s14 = sadd.s32 4294967295, %s1699_s13   ;;  %p1501_p0 = scmp.ge.s32.totalorder %s1699_s13, 1  ;;  %s1699_s13 = sphi %s1759_s13, %s20_s13  }
   0x2   : > { %p320_p1 = scmp.lt.s32.totalorder %s1699_s13, 3 }
   0x4   : > { %p321_p2 = pnand %p1501_p0, %p320_p1 }
   0x5   : > { %p360_p3 = scmp.lt.s32.totalorder (!%p321_p2), %s1497_s14, 1  ;;  %vm436_vm0 = vcmask (!%p321_p2), 261120   ;;  %v1669_v0 = vld [vmem:[%s1956_s2] sm:$0xff] (!%p321_p2)   ;;  %v1701_v2 = vmov (!%p321_p2), 0   ;;  %v379_v4 = vld [vmem:[%s1957_s3 + $0x10] sm:$0xff] (!%p321_p2)  ;;  %v378_v6 = vld [vmem:[%s1957_s3 + $0x8] sm:$0xff] (!%p321_p2) }
   0x6   : > { %324 = sbr.rel (%p321_p2) target bundleno = 1676 (0x68c), region = 60  ;;  %v1670_v1 = vld [vmem:[%s1958_s4] sm:$0xff] (!%p321_p2)   ;;  %1667 = vset.pattern.permute.xlu0 (!%p321_p2), %v1701_v2  ;;  %1668 = vset.pattern.permute.xlu1 (!%p321_p2), %v1701_v2  ;;  %v380_v9 = vld [vmem:[%s1957_s3 + $0x18] sm:$0xff] (!%p321_p2)  ;;  %v1671_v12 = vld [vmem:[%s1956_s2 + $0x8] sm:$0xff] (!%p321_p2)   ;;  %v1702_v17 = vmov (!%p321_p2), 0.0   ;;  %vm779_vm1 = vcmask (!%p321_p2), 1043456  }
   0x7   : > { %1568 = vmatprep.mubr.msk.bf16.mxu0 (!%p321_p2), %vm436_vm0, %v1669_v0  ;;  %1574 = vmatprep.mubr.msk.bf16.mxu1 (!%p321_p2), %vm436_vm0, %v1670_v1  ;;  %v377_v3 = vld [vmem:[%s1957_s3] sm:$0xff] (!%p321_p2)  ;;  %v390_v13 = vld [vmem:[%s1959_s5 + $0x8] sm:$0xff] (!%p321_p2)  ;;  %v391_v15 = vld [vmem:[%s1959_s5 + $0x10] sm:$0xff] (!%p321_p2)  ;;  %vm1703_vm2 = vmmov (!%p321_p2), 0   ;;  %vm775_vm3 = vcmask (!%p321_p2), 64512   ;;  %vm1430_vm4 = vcmask (!%p321_p2), 257024  }
   0x8   : > { %408 = vperm.xlu0 (!%p321_p2), %1667, %v377_v3   ;;  %418 = vperm.xlu1 (!%p321_p2), %1668, %v379_v4   ;;  %v389_v11 = vld [vmem:[%s1959_s5] sm:$0xff] (!%p321_p2)  ;;  %v1672_v14 = vld [vmem:[%s1958_s4 + $0x8] sm:$0xff] (!%p321_p2)   ;;  %v392_v16 = vld [vmem:[%s1959_s5 + $0x18] sm:$0xff] (!%p321_p2) }
   0x9   : > { %v1673_v37 = vld [vmem:[%s1958_s4 + $0x10] sm:$0xff] (!%p321_p2)   ;;  %v1674_v42 = vld [vmem:[%s1958_s4 + $0x18] sm:$0xff] (!%p321_p2)  }
   0xc   : > { %413 = vperm.xlu0 (!%p321_p2), %1667, %v378_v6   ;;  %423 = vperm.xlu1 (!%p321_p2), %1668, %v380_v9  }
   0xd   : > { %s1966_s14 = smov (!%p360_p3, %s1497_s14), 1 }
   0xe   : > { %s1774_s19 = sshll.u32 %s1966_s14, 2 }
   0xf   : > { %s363_s24 = scalar_lea.vmem %s1954_s0, %s1774_s19  ;;  %s367_s29 = scalar_lea.vmem %s1955_s1, %s1774_s19 }
  0x10   : > { %v1787_v5 = vld [vmem:[%s363_s24] sm:$0xf]  ;;  %497 = vperm.xlu0 %1667, %v389_v11   ;;  %502 = vperm.xlu1 %1668, %v390_v13   ;;  %s371_s20 = scalar_lea.vmem %s1964_s10, %s1774_s19 }
  0x11   : > { %1654 = vmatprep.subr.msk.bf16.mxu0 %vm436_vm0, %v1787_v5  ;;  %v405_v7 = vld [vmem:[%s367_s29] sm:$0xf]  ;;  %v444_v8 = vsel %vm436_vm0, %v1787_v5, 0 }
  0x12   : > { %1655 = vmatprep.subr.msk.bf16.mxu1 %vm436_vm0, %v405_v7  ;;  %1567 = vmatpush3.bf16.xpose.msra.mxu0 %v444_v8  ;;  %v568_v10 = vsel %vm436_vm0, %v405_v7, 0 }
  0x13   : > { %1573 = vmatpush3.bf16.xpose.msra.mxu1 %v568_v10  ;;  %1582 = vmatprep.subr.bf16.mxu0 %v1702_v17 }
  0x14   : > { %507 = vperm.xlu0 %1667, %v391_v15   ;;  %512 = vperm.xlu1 %1668, %v392_v16  }
  0x15   : > { %1594 = vmatprep.subr.bf16.mxu1 %v1702_v17 }
  0x19   : > { %1569 = vmatmul.mubr.msk.bf16.vlgmr.msra.gmra.mrb[0].mxu0 %vm436_vm0, %v1671_v12 }
  0x1a   : > { %1575 = vmatmul.mubr.msk.bf16.vlgmr.msra.gmra.mrb[0].mxu1 %vm436_vm0, %v1672_v14  ;;  %1584 = vmatprep.mubr.msk.bf16.mxu0 %vm1703_vm2, %v1702_v17 }
  0x1b   : > { %1578 = vmatprep.mubr.msk.bf16.mxu1 %vm436_vm0, %v1673_v37 }
  0x22   : > { %1579 = vmatmul.mubr.msk.bf16.gmra.mrb[4].mxu1 %vm436_vm0, %v1674_v42 }
  0x23   : > { %1596 = vmatprep.mubr.msk.bf16.mxu1 %vm1703_vm2, %v1702_v17 }
  0x87   : > { %v409_v18 = vpop.permute.xlu0 %408  ;;  %v419_v22 = vpop.permute.xlu1 %418 }
  0x8b   : > { %v414_v19 = vpop.permute.xlu0 %413  ;;  %v424_v41 = vpop.permute.xlu1 %423 }
  0x8f   : > { %v498_v20 = vpop.permute.xlu0 %497  ;;  %v503_v44 = vpop.permute.xlu1 %502 }
  0x93   : > { %v508_v21 = vpop.permute.xlu0 %507  ;;  %v513_v47 = vpop.permute.xlu1 %512 }
  0xec   : > { %v1570_v23 = vpop.f32.mrb[0].mxu0 }
  0xed   : > { %v1576_v24 = vpop.f32.mrb[0].mxu1  ;;  %v480_v25 = vpop.f32.mrb[1].mxu0  ;;  %v489_v38 = vadd.f32 %v1570_v23, %v419_v22 }
  0xee   : > { %v613_v26 = vadd.f32 %v1576_v24, %v508_v21  ;;  %v481_v27 = vadd.f32 %v480_v25, %v409_v18  ;;  %v604_v28 = vpop.f32.mrb[1].mxu1  ;;  %v1571_v29 = vpop.f32.mrb[2].mxu0 }
  0xef   : > { %v605_v30 = vadd.f32 %v604_v28, %v498_v20  ;;  %v483_v31 = vpop.f32.mrb[3].mxu0  ;;  %v1577_v32 = vpop.f32.mrb[2].mxu1  ;;  %v492_v43 = vadd.f32 %v1571_v29, %v424_v41 }
  0xf0   : > { %v769_v33 = vpack.c.bf16 %v613_v26, %v613_v26  ;;  %v484_v34 = vadd.f32 %v483_v31, %v414_v19  ;;  %635 = vxpose.xlu0.b32.start.end [1/1] (short) (narrow) %v481_v27, 8  ;;  %v607_v35 = vpop.f32.mrb[3].mxu1  ;;  %v616_v50 = vadd.f32 %v1577_v32, %v513_v47  ;;  %v394_v26 = vld [vmem:[%s1959_s5 + $0x28] sm:$0xff]  ;;  %v393_v27 = vld [vmem:[%s1959_s5 + $0x20] sm:$0xff] }
  0xf1   : > { %v767_v36 = vpack.c.bf16 %v605_v30, %v605_v30  ;;  %v608_v45 = vadd.f32 %v607_v35, %v503_v44 }
  0xf2   : > { %v873_v39 = vsel %vm779_vm1, %v769_v33, 0  ;;  %667 = vxpose.xlu1.b32.start.end [1/1] (short) (narrow) %v484_v34, 8  ;;  %v770_v55 = vpack.c.bf16 %v616_v50, %v616_v50 }
  0xf3   : > { %v781_v40 = vsel %vm779_vm1, %v767_v36, 0  ;;  %1595 = vmatpush3.bf16.msra.mxu1 %v873_v39  ;;  %v768_v46 = vpack.c.bf16 %v608_v45, %v608_v45 }
  0xf4   : > { %1583 = vmatpush3.bf16.msra.mxu0 %v781_v40  ;;  %699 = vxpose.xlu0.b32.start.end [1/1] (short) (narrow) %v489_v38, 8  ;;  %v919_v57 = vsel %vm779_vm1, %v770_v55, 0 }
  0xf5   : > { %1588 = vmatprep.subr.bf16.mxu0 %v1702_v17  ;;  %1606 = vmatprep.subr.bf16.mxu1 %v1702_v17  ;;  %v827_v51 = vsel %vm779_vm1, %v768_v46, 0  ;;  %v1859_v60 = vpop.f32.mrb[4].mxu1 }
  0xf6   : > { %v620_v61 = vpop.f32.mrb[5].mxu1 }
  0xf7   : > { %v1861_v62 = vpop.f32.mrb[6].mxu1 }
  0xf8   : > { %731 = vxpose.xlu0.b32.start.end [1/1] (short) (narrow) %v492_v43, 8  ;;  %v623_v63 = vpop.f32.mrb[7].mxu1 }
 0x170   : > { %v651_v48 = vpop.trf.xlu0 }
 0x171   : > { %v763_v49 = vpack.c.bf16 %v651_v48, %v651_v48 }
 0x172   : > { %v683_v52 = vpop.trf.xlu1 }
 0x173   : > { %1585 = vmatmul.mubr.msk.bf16.vlgmr.msra.gmra.mrb[4].mxu0 %vm775_vm3, %v763_v49  ;;  %v764_v56 = vpack.c.bf16 %v683_v52, %v683_v52 }
 0x174   : > { %1589 = vmatpush3.bf16.msra.mxu0 %v827_v51  ;;  %v715_v53 = vpop.trf.xlu0  ;;  %1590 = vmatprep.mubr.msk.bf16.mxu0 %vm1703_vm2, %v1702_v17 }
 0x175   : > { %v765_v54 = vpack.c.bf16 %v715_v53, %v715_v53  ;;  %1600 = vmatprep.subr.bf16.mxu0 %v1702_v17 }
 0x177   : > { %1597 = vmatmul.mubr.msk.bf16.vlgmr.msra.gmra.mrb[8].mxu1 %vm775_vm3, %v765_v54 }
 0x178   : > { %1608 = vmatprep.mubr.msk.bf16.mxu1 %vm1703_vm2, %v1702_v17  ;;  %v747_v58 = vpop.trf.xlu0 }
 0x179   : > { %v766_v59 = vpack.c.bf16 %v747_v58, %v747_v58 }
 0x17b   : > { %1591 = vmatmul.mubr.msk.bf16.vlgmr.msra.gmra.mrb[8].mxu0 %vm775_vm3, %v764_v56  ;;  %v395_v56 = vld [vmem:[%s1959_s5 + $0x30] sm:$0xff] }
 0x17c   : > { %1601 = vmatpush3.bf16.msra.mxu0 %v919_v57  ;;  %1602 = vmatprep.mubr.msk.bf16.mxu0 %vm1703_vm2, %v1702_v17  ;;  %v396_v57 = vld [vmem:[%s1959_s5 + $0x38] sm:$0xff] }
 0x17d   : > { %1612 = vmatprep.subr.bf16.mxu0 %v1702_v17 }
 0x183   : > { %1603 = vmatmul.mubr.msk.bf16.vlgmr.msra.gmra.mrb[12].mxu0 %vm775_vm3, %v766_v59 }
 0x184   : > { %1614 = vmatprep.mubr.msk.bf16.mxu0 %vm1703_vm2, %v1702_v17 }
 0x246   : > { %v817_v0 = vpop.f32.mrb[4].mxu0 }
 0x247   : > { %v961_v1 = vmul.f32 0.35355338, %v817_v0  ;;  %v1586_v2 = vpop.f32.mrb[5].mxu0 }
 0x248   : > { %v820_v3 = vpop.f32.mrb[6].mxu0 }
 0x249   : > { %v1587_v4 = vpop.f32.mrb[7].mxu0  ;;  %v965_v6 = vsel %vm775_vm3, %v961_v1, -inf }
 0x24a   : > { %966 = vmax.xlane.f32.xlu0 %v965_v6  ;;  %v909_v7 = vpop.f32.mrb[8].mxu1 }
 0x24b   : > { %v1598_v8 = vpop.f32.mrb[9].mxu1  ;;  %v963_v14 = vmul.f32 0.35355338, %v909_v7 }
 0x24c   : > { %v912_v9 = vpop.f32.mrb[10].mxu1 }
 0x24d   : > { %v1599_v10 = vpop.f32.mrb[11].mxu1  ;;  %v971_v19 = vsel %vm775_vm3, %v963_v14, -inf }
 0x24e   : > { %v863_v11 = vpop.f32.mrb[8].mxu0 }
 0x24f   : > { %v962_v12 = vmul.f32 0.35355338, %v863_v11  ;;  %v1592_v13 = vpop.f32.mrb[9].mxu0 }
 0x250   : > { %v866_v15 = vpop.f32.mrb[10].mxu0 }
 0x251   : > { %v1593_v16 = vpop.f32.mrb[11].mxu0  ;;  %v968_v18 = vsel %vm775_vm3, %v962_v12, -inf }
 0x252   : > { %969 = vmax.xlane.f32.xlu1 %v968_v18 }
 0x256   : > { %972 = vmax.xlane.f32.xlu1 %v971_v19  ;;  %v955_v20 = vpop.f32.mrb[12].mxu0 }
 0x257   : > { %v964_v21 = vmul.f32 0.35355338, %v955_v20  ;;  %v1604_v22 = vpop.f32.mrb[13].mxu0  ;;  %v398_v20 = vld [vmem:[%s1960_s6 + $0x4] sm:$0xf] }
 0x258   : > { %v958_v23 = vpop.f32.mrb[14].mxu0  ;;  %v397_v22 = vld [vmem:[%s1960_s6] sm:$0xf] }
 0x259   : > { %v974_v24 = vsel %vm775_vm3, %v964_v21, -inf  ;;  %v1605_v25 = vpop.f32.mrb[15].mxu0  ;;  %v1205_v23 = vsel %vm779_vm1, %v397_v22, 0 }
 0x25a   : > { %975 = vmax.xlane.f32.xlu0 %v974_v24  ;;  %v400_v24 = vld [vmem:[%s1960_s6 + $0xc] sm:$0xf] }
 0x267   : > { %522 = vperm.xlu1 %1668, %v394_v26  }
 0x270   : > { %517 = vperm.xlu0 %1667, %v393_v27  }
 0x2d7   : > { %v967_v28 = vpop.xlane.xlu0 %966 }
 0x2d8   : > { %v977_v31 = vsub.f32 %v961_v1, %v967_v28  ;;  %v1343_v28 = vsel %vm779_vm1, %v400_v24, 0 }
 0x2da   : > { %v981_v35 = vmul.f32 1.442695, %v977_v31  ;;  %v399_v31 = vld [vmem:[%s1960_s6 + $0x8] sm:$0xf] }
 0x2df   : > { %v970_v29 = vpop.xlane.xlu1 %969 }
 0x2e0   : > { %v978_v30 = vsub.f32 %v962_v12, %v970_v29 }
 0x2e2   : > { %v983_v32 = vmul.f32 1.442695, %v978_v30 }
 0x2e3   : > { %v973_v33 = vpop.xlane.xlu1 %972 }
 0x2e4   : > { %1675 = vpow2.f32 %v983_v32  ;;  %v979_v34 = vsub.f32 %v963_v14, %v973_v33 }
 0x2e6   : > { %v985_v36 = vmul.f32 1.442695, %v979_v34 }
 0x2e7   : > { %v523_v37 = vpop.permute.xlu1 %522  ;;  %v976_v38 = vpop.xlane.xlu0 %975 }
 0x2e8   : > { %1677 = vpow2.f32 %v985_v36  ;;  %v624_v39 = vadd.f32 %v623_v63, %v523_v37  ;;  %v980_v40 = vsub.f32 %v964_v21, %v976_v38  ;;  %v1251_v21 = vsel %vm779_vm1, %v398_v20, 0 }
 0x2e9   : > { %1679 = vpow2.f32 %v981_v35  ;;  %v1297_v35 = vsel %vm779_vm1, %v399_v31, 0 }
 0x2ea   : > { %v772_v41 = vpack.c.bf16 %v624_v39, %v624_v39  ;;  %v987_v42 = vmul.f32 1.442695, %v980_v40 }
 0x2ec   : > { %v1063_v43 = vsel %vm775_vm3, %v772_v41, 0  ;;  %1681 = vpow2.f32 %v987_v42 }
 0x2ed   : > { %1613 = vmatpush3.bf16.xpose.msra.mxu0 %v1063_v43 }
 0x2ee   : > { %v1676_v44 = vpop.eup %1675  ;;  %1624 = vmatprep.subr.bf16.mxu0 %v1702_v17 }
 0x2ef   : > { %v518_v45 = vpop.permute.xlu0 %517  ;;  %v992_v46 = vsel %vm775_vm3, %v1676_v44, 0.0 }
 0x2f0   : > { %v621_v47 = vadd.f32 %v620_v61, %v518_v45  ;;  %993 = vadd.xlane.f32.xlu0 %v992_v46 }
 0x2f2   : > { %v1678_v48 = vpop.eup %1677  ;;  %v771_v49 = vpack.c.bf16 %v621_v47, %v621_v47 }
 0x2f3   : > { %v995_v50 = vsel %vm775_vm3, %v1678_v48, 0.0  ;;  %v1680_v51 = vpop.eup %1679 }
 0x2f4   : > { %v1017_v52 = vsel %vm775_vm3, %v771_v49, 0  ;;  %996 = vadd.xlane.f32.xlu1 %v995_v50  ;;  %v989_v53 = vsel %vm775_vm3, %v1680_v51, 0.0 }
 0x2f5   : > { %1607 = vmatpush3.bf16.xpose.msra.mxu1 %v1017_v52 }
 0x2f6   : > { %1618 = vmatprep.subr.bf16.mxu1 %v1702_v17  ;;  %v1682_v54 = vpop.eup %1681 }
 0x2f7   : > { %v998_v55 = vsel %vm775_vm3, %v1682_v54, 0.0 }
 0x2f8   : > { %990 = vadd.xlane.f32.xlu1 %v989_v53 }
 0x2fc   : > { %999 = vadd.xlane.f32.xlu1 %v998_v55 }
 0x306   : > { %527 = vperm.xlu0 %1667, %v395_v56  }
 0x30d   : > { %532 = vperm.xlu1 %1668, %v396_v57  }
 0x37d   : > { %v994_v58 = vpop.xlane.xlu0 %993 }
 0x37e   : > { %1683 = vrcp.f32 %v994_v58 }
 0x381   : > { %v997_v59 = vpop.xlane.xlu1 %996 }
 0x385   : > { %v991_v61 = vpop.xlane.xlu1 %990  ;;  %v528_v2 = vpop.permute.xlu0 %527 }
 0x386   : > { %1685 = vrcp.f32 %v991_v61  ;;  %v629_v4 = vadd.f32 %v1859_v60, %v528_v2 }
 0x387   : > { %1687 = vrcp.f32 %v997_v59 }
 0x388   : > { %v1684_v63 = vpop.eup %1683  ;;  %v773_v11 = vpack.c.bf16 %v629_v4, %v629_v4 }
 0x389   : > { %v1006_v0 = vmul.f32 %v1684_v63, %v1676_v44  ;;  %v1000_v1 = vpop.xlane.xlu1 %999 }
 0x38a   : > { %1689 = vrcp.f32 %v1000_v1  ;;  %v1109_v60 = vsel %vm775_vm3, %v773_v11, 0 }
 0x38b   : > { %v1010_v3 = vpack.c.bf16 %v1006_v0, %v1006_v0 }
 0x38d   : > { %v533_v6 = vpop.permute.xlu1 %532  ;;  %1615 = vmatmul.mubr.msk.bf16.vlgmr.msra.gmra.mrb[16].mxu0 %vm775_vm3, %v1010_v3 }
 0x38e   : > { %v632_v7 = vadd.f32 %v1861_v62, %v533_v6  ;;  %1626 = vmatprep.mubr.msk.bf16.mxu0 %vm1703_vm2, %v1702_v17 }
 0x390   : > { %v1686_v8 = vpop.eup %1685  ;;  %v774_v9 = vpack.c.bf16 %v632_v7, %v632_v7 }
 0x391   : > { %v1005_v10 = vmul.f32 %v1686_v8, %v1680_v51  ;;  %v1688_v13 = vpop.eup %1687  ;;  %v1529_v8 = vld [vmem:[%s1961_s7] ss:$0 sm:$0xff] }
 0x392   : > { %v1155_v12 = vsel %vm775_vm3, %v774_v9, 0  ;;  %v1007_v62 = vmul.f32 %v1688_v13, %v1678_v48  ;;  %v1399_v9 = vunpack.c.l.bf16 %v1787_v5  ;;  %v1530_v5 = vld [vmem:[%s1962_s8] ss:$0 sm:$0xff] }
 0x393   : > { %1625 = vmatpush3.bf16.xpose.msra.mxu0 %v1155_v12  ;;  %v1009_v14 = vpack.c.bf16 %v1005_v10, %v1005_v10 }
 0x394   : > { %v1690_v15 = vpop.eup %1689  ;;  %1636 = vmatprep.subr.bf16.mxu0 %v1702_v17  ;;  %v1011_v19 = vpack.c.bf16 %v1007_v62, %v1007_v62 }
 0x395   : > { %v1008_v16 = vmul.f32 %v1690_v15, %v1682_v54  ;;  %1609 = vmatmul.mubr.msk.bf16.vlgmr.msra.gmra.mrb[12].mxu1 %vm775_vm3, %v1009_v14 }
 0x396   : > { %1619 = vmatpush3.bf16.xpose.msra.mxu1 %v1109_v60  ;;  %1620 = vmatprep.mubr.msk.bf16.mxu1 %vm1703_vm2, %v1702_v17 }
 0x397   : > { %v1012_v18 = vpack.c.bf16 %v1008_v16, %v1008_v16  ;;  %1630 = vmatprep.subr.bf16.mxu1 %v1702_v17 }
 0x39a   : > { %1627 = vmatmul.mubr.msk.bf16.vlgmr.msra.gmra.mrb[20].mxu0 %vm775_vm3, %v1012_v18 }
 0x39b   : > { %1638 = vmatprep.mubr.msk.bf16.mxu0 %vm1703_vm2, %v1702_v17  ;;  %1637 = vmatpush3.bf16.msra.mxu0 %v1251_v21 }
 0x39c   : > { %1648 = vmatprep.subr.bf16.mxu0 %v1702_v17 }
 0x39d   : > { %1621 = vmatmul.mubr.msk.bf16.vlgmr.msra.gmra.mrb[16].mxu1 %vm775_vm3, %v1011_v19 }
 0x39e   : > { %1632 = vmatprep.mubr.msk.bf16.mxu1 %vm1703_vm2, %v1702_v17  ;;  %1631 = vmatpush3.bf16.msra.mxu1 %v1205_v23  ;;  %v1531_v23 = vld [vmem:[%s1963_s9] ss:$0 sm:$0xff] }
 0x39f   : > { %1642 = vmatprep.subr.bf16.mxu1 %v1702_v17 }
 0x460   : > { %v1099_v25 = vpop.f32.mrb[16].mxu0 }
 0x461   : > { %v1198_v26 = vpack.c.bf16 %v1099_v25, %v1099_v25  ;;  %v1616_v27 = vpop.f32.mrb[17].mxu0 }
 0x462   : > { %v1102_v29 = vpop.f32.mrb[18].mxu0 }
 0x463   : > { %v1617_v30 = vpop.f32.mrb[19].mxu0  ;;  %1639 = vmatmul.mubr.msk.bf16.vlgmr.msra.gmra.mrb[24].mxu0 %vm775_vm3, %v1198_v26 }
 0x464   : > { %1649 = vmatpush3.bf16.msra.mxu0 %v1343_v28  ;;  %1650 = vmatprep.mubr.msk.bf16.mxu0 %vm1703_vm2, %v1702_v17 }
 0x468   : > { %v1053_v32 = vpop.f32.mrb[12].mxu1 }
 0x469   : > { %v1197_v33 = vpack.c.bf16 %v1053_v32, %v1053_v32  ;;  %v1610_v34 = vpop.f32.mrb[13].mxu1 }
 0x46a   : > { %v1056_v36 = vpop.f32.mrb[14].mxu1 }
 0x46b   : > { %v1611_v37 = vpop.f32.mrb[15].mxu1  ;;  %1633 = vmatmul.mubr.msk.bf16.vlgmr.msra.gmra.mrb[20].mxu1 %vm775_vm3, %v1197_v33 }
 0x46c   : > { %1643 = vmatpush3.bf16.msra.mxu1 %v1297_v35  ;;  %1644 = vmatprep.mubr.msk.bf16.mxu1 %vm1703_vm2, %v1702_v17 }
 0x46d   : > { %v1191_v38 = vpop.f32.mrb[20].mxu0 }
 0x46e   : > { %v1200_v39 = vpack.c.bf16 %v1191_v38, %v1191_v38  ;;  %v1628_v40 = vpop.f32.mrb[21].mxu0 }
 0x46f   : > { %v1194_v41 = vpop.f32.mrb[22].mxu0 }
 0x470   : > { %v1145_v42 = vpop.f32.mrb[16].mxu1  ;;  %v1629_v43 = vpop.f32.mrb[23].mxu0  ;;  %1651 = vmatmul.mubr.msk.bf16.vlgmr.msra.gmra.mrb[28].mxu0 %vm775_vm3, %v1200_v39 }
 0x471   : > { %v1199_v44 = vpack.c.bf16 %v1145_v42, %v1145_v42  ;;  %v1622_v45 = vpop.f32.mrb[17].mxu1 }
 0x472   : > { %v1148_v46 = vpop.f32.mrb[18].mxu1 }
 0x473   : > { %v1623_v47 = vpop.f32.mrb[19].mxu1  ;;  %1645 = vmatmul.mubr.msk.bf16.vlgmr.msra.gmra.mrb[24].mxu1 %vm775_vm3, %v1199_v44 }
 0x536   : > { %v1287_v48 = vpop.f32.mrb[24].mxu0 }
 0x537   : > { %v1640_v49 = vpop.f32.mrb[25].mxu0  ;;  %v1386_v17 = vsel %vm436_vm0, %v1287_v48, 0.0 }
 0x538   : > { %v1290_v50 = vpop.f32.mrb[26].mxu0 }
 0x539   : > { %v1641_v51 = vpop.f32.mrb[27].mxu0 }
 0x53e   : > { %v1241_v52 = vpop.f32.mrb[20].mxu1 }
 0x53f   : > { %v1385_v53 = vsel %vm436_vm0, %v1241_v52, 0.0  ;;  %v1634_v54 = vpop.f32.mrb[21].mxu1 }
 0x540   : > { %v1387_v55 = vadd.f32 %v1386_v17, %v1385_v53  ;;  %v1244_v56 = vpop.f32.mrb[22].mxu1 }
 0x541   : > { %v1635_v57 = vpop.f32.mrb[23].mxu1 }
 0x543   : > { %v1379_v58 = vpop.f32.mrb[28].mxu0 }
 0x544   : > { %v1652_v59 = vpop.f32.mrb[29].mxu0  ;;  %v1390_v6 = vsel %vm436_vm0, %v1379_v58, 0.0 }
 0x545   : > { %v1382_v61 = vpop.f32.mrb[30].mxu0 }
 0x546   : > { %v1333_v63 = vpop.f32.mrb[24].mxu1  ;;  %v1653_v0 = vpop.f32.mrb[31].mxu0 }
 0x547   : > { %v1388_v1 = vsel %vm436_vm0, %v1333_v63, 0.0  ;;  %v1646_v2 = vpop.f32.mrb[25].mxu1 }
 0x548   : > { %v1389_v3 = vadd.f32 %v1388_v1, %v1387_v55  ;;  %v1336_v4 = vpop.f32.mrb[26].mxu1 }
 0x549   : > { %v1647_v7 = vpop.f32.mrb[27].mxu1 }
 0x54a   : > { %v1391_v10 = vadd.f32 %v1390_v6, %v1389_v3 }
 0x54c   : > { %v1398_v11 = vadd.f32 %v1529_v8, %v1391_v10 }
 0x54e   : > { %v1400_v12 = vadd.f32 %v1399_v9, %v1398_v11 }
 0x550   : > { %v1401_v13 = vsel %vm436_vm0, %v1400_v12, 0.0 }
 0x551   : > { %1402 = vadd.xlane.f32.xlu0 %v1401_v13 }
 0x5de   : > { %v1403_v14 = vpop.xlane.xlu0 %1402 }
 0x5df   : > { %v1405_v15 = vmul.f32 0.03125, %v1403_v14 }
 0x5e1   : > { %v1406_v60 = vsub.f32 %v1400_v12, %v1405_v15 }
 0x5e3   : > { %v1407_v16 = vmul.f32 %v1406_v60, %v1406_v60 }
 0x5e5   : > { %v1408_v62 = vsel %vm436_vm0, %v1407_v16, 0.0 }
 0x5e6   : > { %1409 = vadd.xlane.f32.xlu1 %v1408_v62 }
 0x673   : > { %v1410_v18 = vpop.xlane.xlu1 %1409 }
 0x674   : > { %v1411_v19 = vmul.f32 0.03125, %v1410_v18 }
 0x676   : > { %v1412_v20 = vadd.f32 1e-05, %v1411_v19 }
 0x678   : > { %1691 = vrsqrt.f32 %v1412_v20 }
 0x682   : > { %v1692_v21 = vpop.eup %1691 }
 0x683   : > { %v1414_v22 = vmul.f32 %v1692_v21, %v1406_v60 }
 0x685   : > { %v1421_v24 = vmul.f32 %v1530_v5, %v1414_v22 }
 0x687   : > { %v1428_v25 = vadd.f32 %v1531_v23, %v1421_v24 }
 0x689   : > { %v1429_v26 = vpack.c.bf16 %v1428_v25, %v1428_v25 }
 0x68b   : > { %1431 = vst.msk [vmem:[%s371_s20] sm:$0xf] %vm1430_vm4, %v1429_v26 }
 0x68c PF: > { %s20_s13 = sadd.s32 1, %s1699_s13  }
 0x68d   : > { %p17_p4 = scmp.ge.s32.totalorder %s20_s13, 4  }
 0x68f   :  { %19 = sbr.rel (!%p17_p4) target bundleno = 1 (0x1), region = 93 }

// kernel: decoder_forward.8
= control target key start
LH: loop header
LB: loop body
LE: loop exit
PB: predicated region body
PF: predicated region fallthrough
CT: control target
= control target key end

     0   :  { %s845_s24 = smov 0   ;;  %s847_s25 = smov 0   ;;  %s932_s0 = inlined_call_operand.vmem [shape: bf16[16,32], index: 0, kind: input, shape index: {}]   ;;  %s933_s1 = inlined_call_operand.vmem [shape: bf16[32,128], index: 1, kind: input, shape index: {}]   ;;  %s934_s2 = inlined_call_operand.vmem [shape: f32[1,128], index: 2, kind: input, shape index: {}]   ;;  %s935_s3 = inlined_call_operand.vmem [shape: bf16[128,32], index: 3, kind: input, shape index: {}]   ;;  %s936_s4 = inlined_call_operand.vmem [shape: f32[1,32], index: 4, kind: input, shape index: {}]   ;;  %s937_s5 = inlined_call_operand.vmem [shape: f32[1,32], index: 5, kind: input, shape index: {}]   ;;  %s938_s6 = inlined_call_operand.vmem [shape: f32[1,32], index: 6, kind: input, shape index: {}]   ;;  %s939_s7 = inlined_call_operand.vmem [shape: bf16[16,32], index: 7, kind: output, shape index: {}]  }
   0x1   :  { %s849_s26 = smov 0  }
   0x2 LB: > { %s29_s27 = sadd.s32 1, %s797_s25  ;;  %p681_p0 = scmp.ge.s32.totalorder %s801_s26, 1  ;;  %s801_s26 = sphi %s849_s26, %s17_s26   ;;  %s797_s25 = sphi %s847_s25, %s941_s25   ;;  %s793_s24 = sphi %s845_s24, %s940_s24  }
   0x3   : > { %p31_p1 = scmp.ge.s32.totalorder %s29_s27, 2  ;;  %p276_p2 = scmp.lt.s32.totalorder %s801_s26, 3 }
   0x5   : > { %s943_s27 = smov (%p31_p1, %s29_s27), 0  ;;  %p277_p3 = pnand %p681_p0, %p276_p2 }
   0x6   : > { %v767_v0 = vld [vmem:[%s933_s1] sm:$0xff] (!%p277_p3)   ;;  %v803_v1 = vmov (!%p277_p3), 0.0   ;;  %v768_v2 = vld [vmem:[%s933_s1 + $0x8] sm:$0xff] (!%p277_p3)   ;;  %vm804_vm0 = vmmov (!%p277_p3), 0   ;;  %p318_p4 = scmp.lt.s32.totalorder (!%p277_p3), %s793_s24, 1  ;;  %vm344_vm1 = vcmask (!%p277_p3), 261120  }
   0x7   : > { %280 = sbr.rel (%p277_p3) target bundleno = 778 (0x30a), region = 48  ;;  %713 = vmatprep.subr.bf16.mxu0 (!%p277_p3), %v803_v1  ;;  %721 = vmatprep.subr.bf16.mxu1 (!%p277_p3), %v803_v1  ;;  %345 = vst.msk [vmem:[#allocation2] sm:$0xff] (!%p277_p3), %vm344_vm1, %v803_v1  ;;  %v769_v3 = vld [vmem:[%s935_s3] sm:$0xff] (!%p277_p3)   ;;  %v770_v4 = vld [vmem:[%s935_s3 + $0x8] sm:$0xff] (!%p277_p3)   ;;  %v771_v6 = vld [vmem:[%s935_s3 + $0x10] sm:$0xff] (!%p277_p3)   ;;  %vm568_vm2 = vcmask (!%p277_p3), 257024  }
   0x8   : > { %714 = vmatpush3.bf16.msra.mxu0 (!%p277_p3), %v767_v0  ;;  %717 = vmatprep.mubr.msk.bf16.mxu0 (!%p277_p3), %vm804_vm0, %v803_v1  ;;  %v772_v7 = vld [vmem:[%s935_s3 + $0x18] sm:$0xff] (!%p277_p3)   ;;  %v773_v8 = vld [vmem:[%s935_s3 + $0x20] sm:$0xff] (!%p277_p3)   ;;  %v774_v9 = vld [vmem:[%s935_s3 + $0x28] sm:$0xff] (!%p277_p3)  }
   0x9   : > { %715 = vmatprep.subr.bf16.mxu0 (!%p277_p3), %v803_v1  ;;  %737 = vmatprep.mubr.msk.bf16.mxu1 (!%p277_p3), %vm804_vm0, %v803_v1  ;;  %v775_v10 = vld [vmem:[%s935_s3 + $0x30] sm:$0xff] (!%p277_p3)   ;;  %v776_v11 = vld [vmem:[%s935_s3 + $0x38] sm:$0xff] (!%p277_p3)   ;;  %v684_v12 = vld [vmem:[%s934_s2] ss:$0 sm:$0xff] (!%p277_p3) }
   0xa   : > { %722 = vmatpush3.bf16.msra.mxu1 (!%p277_p3), %v769_v3  ;;  %v696_v26 = vld [vmem:[%s936_s4] ss:$0 sm:$0xff] (!%p277_p3) }
   0xb   : > { %723 = vmatprep.subr.bf16.mxu1 (!%p277_p3), %v803_v1  ;;  %v697_v41 = vld [vmem:[%s937_s5] ss:$0 sm:$0xff] (!%p277_p3) }
   0xc   : > { %716 = vmatpush3.bf16.msra.mxu0 (!%p277_p3), %v768_v2  ;;  %v698_v43 = vld [vmem:[%s938_s6] ss:$0 sm:$0xff] (!%p277_p3) }
   0xe   : > { %s945_s24 = smov (!%p318_p4, %s793_s24), 1  ;;  %724 = vmatpush3.bf16.msra.mxu1 %v770_v4  ;;  %v415_v20 = vld [vmem:[#allocation2] sm:$0xff] }
   0xf   : > { %s682_s13 = sshll.u32 %s945_s24, 2  ;;  %725 = vmatprep.subr.bf16.mxu1 %v803_v1 }
  0x10   : > { %s321_s16 = scalar_lea.vmem %s932_s0, %s682_s13  ;;  %s338_s21 = scalar_lea.vmem %s939_s7, %s682_s13 }
  0x11   : > { %v346_v5 = vld [vmem:[%s321_s16] sm:$0xf] }
  0x12   : > { %718 = vmatmul.mubr.msk.bf16.vlgmr.msra.gmra.mrb[0].mxu0 %vm344_vm1, %v346_v5  ;;  %726 = vmatpush3.bf16.msra.mxu1 %v771_v6  ;;  %v535_v27 = vunpack.c.l.bf16 %v346_v5 }
  0x13   : > { %727 = vmatprep.subr.bf16.mxu1 %v803_v1 }
  0x16   : > { %728 = vmatpush3.bf16.msra.mxu1 %v772_v7 }
  0x17   : > { %729 = vmatprep.subr.bf16.mxu1 %v803_v1 }
  0x1a   : > { %730 = vmatpush3.bf16.msra.mxu1 %v773_v8 }
  0x1b   : > { %731 = vmatprep.subr.bf16.mxu1 %v803_v1 }
  0x1e   : > { %732 = vmatpush3.bf16.msra.mxu1 %v774_v9 }
  0x1f   : > { %733 = vmatprep.subr.bf16.mxu1 %v803_v1 }
  0x22   : > { %734 = vmatpush3.bf16.msra.mxu1 %v775_v10 }
  0x23   : > { %735 = vmatprep.subr.bf16.mxu1 %v803_v1 }
  0x26   : > { %736 = vmatpush3.bf16.msra.mxu1 %v776_v11 }
  0xe5   : > { %v408_v13 = vpop.f32.mrb[0].mxu0 }
  0xe6   : > { %v409_v14 = vadd.f32 %v684_v12, %v408_v13  ;;  %v719_v15 = vpop.f32.mrb[1].mxu0 }
  0xe7   : > { %v411_v16 = vpop.f32.mrb[2].mxu0 }
  0xe8   : > { %v414_v17 = vmax.f32 %v409_v14, 0.0  ;;  %v720_v18 = vpop.f32.mrb[3].mxu0 }
  0xea   : > { %v416_v19 = vpack.c.bf16 %v414_v17, %v414_v17 }
  0xec   : > { %738 = vmatmul.mubr.bf16.vlgmr.msra.gmra.mrb[0].mxu1 %v416_v19 }
 0x1bf   : > { %v515_v21 = vpop.f32.mrb[0].mxu1 }
 0x1c0   : > { %v521_v22 = vadd.f32 %v515_v21, %v415_v20  ;;  %v739_v23 = vpop.f32.mrb[1].mxu1 }
 0x1c1   : > { %v518_v24 = vpop.f32.mrb[2].mxu1 }
 0x1c2   : > { %522 = vst.msk [vmem:[#allocation2] sm:$0xff] %vm344_vm1, %v521_v22  ;;  %v740_v25 = vpop.f32.mrb[3].mxu1 }
 0x1c9   : > { %v526_v28 = vld [vmem:[#allocation2] sm:$0xff] }
 0x1ca   : > { %v534_v29 = vadd.f32 %v696_v26, %v526_v28 }
 0x1cc   : > { %v536_v30 = vadd.f32 %v535_v27, %v534_v29 }
 0x1ce   : > { %v539_v31 = vsel %vm344_vm1, %v536_v30, 0.0 }
 0x1cf   : > { %540 = vadd.xlane.f32.xlu0 %v539_v31 }
 0x25c   : > { %v541_v32 = vpop.xlane.xlu0 %540 }
 0x25d   : > { %v543_v33 = vmul.f32 0.03125, %v541_v32 }
 0x25f   : > { %v544_v34 = vsub.f32 %v536_v30, %v543_v33 }
 0x261   : > { %v545_v35 = vmul.f32 %v544_v34, %v544_v34 }
 0x263   : > { %v546_v36 = vsel %vm344_vm1, %v545_v35, 0.0 }
 0x264   : > { %547 = vadd.xlane.f32.xlu0 %v546_v36 }
 0x2f1   : > { %v548_v37 = vpop.xlane.xlu0 %547 }
 0x2f2   : > { %v549_v38 = vmul.f32 0.03125, %v548_v37 }
 0x2f4   : > { %v550_v39 = vadd.f32 1e-05, %v549_v38 }
 0x2f6   : > { %777 = vrsqrt.f32 %v550_v39 }
 0x300   : > { %v778_v40 = vpop.eup %777 }
 0x301   : > { %v552_v42 = vmul.f32 %v778_v40, %v544_v34 }
 0x303   : > { %v559_v44 = vmul.f32 %v697_v41, %v552_v42 }
 0x305   : > { %v566_v45 = vadd.f32 %v698_v43, %v559_v44 }
 0x307   : > { %v567_v46 = vpack.c.bf16 %v566_v45, %v566_v45 }
 0x309   : > { %569 = vst.msk [vmem:[%s338_s21] sm:$0xf] %vm568_vm2, %v567_v46 }
 0x30a PF: > { %s17_s26 = sadd.s32 1, %s801_s26   ;;  %s940_s24 = smov %s797_s25 }
 0x30b   : > { %p14_p5 = scmp.ge.s32.totalorder %s17_s26, 4   ;;  %s941_s25 = smov %s943_s27 }
 0x30d   :  { %16 = sbr.rel (!%p14_p5) target bundleno = 2 (0x2), region = 95 }

</bundles_post_ra>
